<compile_context>
chip_gen: v6e
topology: v6e:2x2x1
jax: 0.10.0
libtpu: 0.0.40
codegen_flags: <defaults>
</compile_context>

<pallas_src>
import math

import jax
import jax.numpy as jnp
from jax.experimental import pallas as pl
from jax.experimental.pallas import tpu as pltpu

# ----- small synthetic BERT config -----
VOCAB = 100
TYPE_VOCAB = 2
MAX_POS = 16
HIDDEN = 32
NUM_HEADS = 4
HEAD_DIM = HIDDEN // NUM_HEADS
INTERMEDIATE = 64
NUM_LAYERS = 2
LN_EPS = 1e-12


def _layernorm(x, g, b):
    mu = jnp.mean(x, axis=-1, keepdims=True)
    var = jnp.mean(jnp.square(x - mu), axis=-1, keepdims=True)
    return (x - mu) * jax.lax.rsqrt(var + LN_EPS) * g + b


def _gemm(x, w_bf16):
    # bf16 MXU inputs, f32 accumulation (weights are pre-cast to bf16).
    return jnp.dot(x.astype(jnp.bfloat16), w_bf16,
                   preferred_element_type=jnp.float32)


# ---------------------------- fused Pallas kernel ----------------------------

def bert_fused_kernel(x_ref, am_ref, emb_g_ref, emb_b_ref,
                      wq_ref, bq_ref, wk_ref, bk_ref, wv_ref, bv_ref,
                      wo_ref, bo_ref, ln1g_ref, ln1b_ref,
                      wi_ref, bi_ref, wo2_ref, bo2_ref,
                      ln2g_ref, ln2b_ref, o_ref):
    S, H = x_ref.shape[1], x_ref.shape[2]
    scale = 1.0 / math.sqrt(HEAD_DIM)

    # ---- embedding LayerNorm (f32) ----
    h = _layernorm(x_ref[0], emb_g_ref[...], emb_b_ref[...])            # (S, H)

    # additive attention mask for this batch element, broadcast over heads/rows
    am = am_ref[0]                                                       # (1, S)

    for l in range(NUM_LAYERS):                      # static layer loop
        # ---- Q / K / V: three plain 2-D GEMMs with shared 2-D weights ----
        q = _gemm(h, wq_ref[l]) + bq_ref[l]                              # (S, H)
        k = _gemm(h, wk_ref[l]) + bk_ref[l]
        v = _gemm(h, wv_ref[l]) + bv_ref[l]

        # head split along a leading (major) axis: (S, H) -> (NH, S, HD)
        def heads(t):
            return jnp.transpose(t.reshape(S, NUM_HEADS, HEAD_DIM), (1, 0, 2))

        qh = heads(q).astype(jnp.bfloat16)
        kh = heads(k).astype(jnp.bfloat16)
        vh = heads(v).astype(jnp.bfloat16)

        # ---- attention core, batched over the NH heads ----
        s = jnp.einsum('nsd,ntd->nst', qh, kh,
                       preferred_element_type=jnp.float32) * scale + am  # (NH,S,S)
        s = s - jnp.max(s, axis=-1, keepdims=True)
        p = jnp.exp(s)                                                   # f32 softmax
        p = p * pl.reciprocal(jnp.sum(p, axis=-1, keepdims=True), approx=True)
        ctx = jnp.einsum('nst,ntd->nsd', p.astype(jnp.bfloat16), vh,
                         preferred_element_type=jnp.float32)             # (NH,S,HD)

        # concat heads back -> (S, H); ONE (S,H)@(H,H) output projection
        ctx2 = jnp.transpose(ctx, (1, 0, 2)).reshape(S, H)
        attn = _gemm(ctx2, wo_ref[l]) + bo_ref[l]                        # (S, H)

        h1 = _layernorm(h + attn, ln1g_ref[l], ln1b_ref[l])

        # ---- feed-forward: flat 2-D GEMMs ----
        ff = _gemm(h1, wi_ref[l]) + bi_ref[l]                            # (S, I)
        ff = jax.nn.gelu(ff, approximate=True)
        ff = _gemm(ff, wo2_ref[l]) + bo2_ref[l]                          # (S, H)

        h = _layernorm(h1 + ff, ln2g_ref[l], ln2b_ref[l])

    # ---- mean pool over tokens (static S, as in the PyTorch spec) ----
    o_ref[...] = (jnp.sum(h, axis=0, keepdims=True) * (1.0 / S)).reshape(1, 1, H)


# ---------------------------- wrapper ----------------------------

def _resident(shape):
    # full-array block with a constant index_map -> loaded once, stays in VMEM
    nd = len(shape)
    return pl.BlockSpec(shape, lambda b, _n=nd: (0,) * _n)


def bert_encoder_forward(input_ids, mask, segment, params):
    B, S = input_ids.shape
    L, H, I = NUM_LAYERS, HIDDEN, INTERMEDIATE

    # --- embeddings (gather glue in plain JAX) ---
    word = jnp.take(params["word_emb"], input_ids, axis=0)              # (B,S,H)
    pos = params["pos_emb"][:S][None, :, :]                             # (1,S,H)
    typ = jnp.take(params["type_emb"], segment, axis=0)                 # (B,S,H)
    x = (word + pos + typ).astype(jnp.float32)

    # HuggingFace extended attention mask: (1 - mask) * -10000, shaped (B,1,S)
    add_mask = ((1.0 - mask.astype(jnp.float32)) * -10000.0).reshape(B, 1, S)

    bf16 = lambda w: w.astype(jnp.bfloat16)
    inputs = (x, add_mask,
              params["emb_ln_g"], params["emb_ln_b"],
              bf16(params["wq"]), params["bq"],
              bf16(params["wk"]), params["bk"],
              bf16(params["wv"]), params["bv"],
              bf16(params["wo"]), params["bo"],
              params["ln1_g"], params["ln1_b"],
              bf16(params["wi"]), params["bi"],
              bf16(params["wo2"]), params["bo2"],
              params["ln2_g"], params["ln2_b"])

    in_specs = [
        pl.BlockSpec((1, S, H), lambda b: (b, 0, 0)),      # x
        pl.BlockSpec((1, 1, S), lambda b: (b, 0, 0)),      # additive mask
        _resident((1, H)), _resident((1, H)),              # emb LN
        _resident((L, H, H)), _resident((L, 1, H)),        # Wq, bq
        _resident((L, H, H)), _resident((L, 1, H)),        # Wk, bk
        _resident((L, H, H)), _resident((L, 1, H)),        # Wv, bv
        _resident((L, H, H)), _resident((L, 1, H)),        # Wo, bo
        _resident((L, 1, H)), _resident((L, 1, H)),        # LN1
        _resident((L, H, I)), _resident((L, 1, I)),        # Wi, bi
        _resident((L, I, H)), _resident((L, 1, H)),        # Wo2, bo2
        _resident((L, 1, H)), _resident((L, 1, H)),        # LN2
    ]

    out = pl.pallas_call(
        bert_fused_kernel,
        out_shape=jax.ShapeDtypeStruct((B, 1, H), jnp.float32),
        grid=(B,),
        in_specs=in_specs,
        out_specs=pl.BlockSpec((1, 1, H), lambda b: (b, 0, 0)),
        compiler_params=pltpu.CompilerParams(
            dimension_semantics=("parallel",)),             # v7x: 2 TCs share batch
    )(*inputs)
    return out.reshape(B, H)


# ---------------------------- parameters ----------------------------

def init_params(key):
    def norm(k, shape, scale=0.02):
        return scale * jax.random.normal(k, shape, dtype=jnp.float32)

    ks = jax.random.split(key, 9)
    L, H, I = NUM_LAYERS, HIDDEN, INTERMEDIATE
    return {
        "word_emb": norm(ks[0], (VOCAB, H)),
        "pos_emb": norm(ks[1], (MAX_POS, H)),
        "type_emb": norm(ks[2], (TYPE_VOCAB, H)),
        "emb_ln_g": jnp.ones((1, H), jnp.float32),
        "emb_ln_b": jnp.zeros((1, H), jnp.float32),
        "wq": norm(ks[3], (L, H, H)), "bq": jnp.zeros((L, 1, H), jnp.float32),
        "wk": norm(ks[4], (L, H, H)), "bk": jnp.zeros((L, 1, H), jnp.float32),
        "wv": norm(ks[5], (L, H, H)), "bv": jnp.zeros((L, 1, H), jnp.float32),
        "wo": norm(ks[6], (L, H, H)), "bo": jnp.zeros((L, 1, H), jnp.float32),
        "ln1_g": jnp.ones((L, 1, H), jnp.float32),
        "ln1_b": jnp.zeros((L, 1, H), jnp.float32),
        "wi": norm(ks[7], (L, H, I)), "bi": jnp.zeros((L, 1, I), jnp.float32),
        "wo2": norm(ks[8], (L, I, H)), "bo2": jnp.zeros((L, 1, H), jnp.float32),
        "ln2_g": jnp.ones((L, 1, H), jnp.float32),
        "ln2_b": jnp.zeros((L, 1, H), jnp.float32),
    }


if __name__ == "__main__":
    key = jax.random.PRNGKey(0)
    B, S = 2, 8
    params = init_params(key)

    kid, _ = jax.random.split(key)
    input_ids = jax.random.randint(kid, (B, S), 0, VOCAB, dtype=jnp.int32)
    mask = jnp.ones((B, S), dtype=jnp.int32)       # attention_mask
    segment = jnp.zeros((B, S), dtype=jnp.int32)   # token_type_ids

    feat = bert_encoder_forward(input_ids, mask, segment, params)
    jax.block_until_ready(feat)
    assert feat.shape == (B, HIDDEN) and feat.dtype == jnp.float32
    assert bool(jnp.all(jnp.isfinite(feat)))
    print("KERNEL_OK")
</pallas_src>

<mosaic_0001>
module attributes {stable_mosaic.version = 11 : i64} {
  func.func @bert_fused_kernel(%arg0: i32, %arg1: memref<1x8x32xf32, #tpu.memory_space<vmem>>, %arg2: memref<1x1x8xf32, #tpu.memory_space<vmem>>, %arg3: memref<1x32xf32, #tpu.memory_space<vmem>>, %arg4: memref<1x32xf32, #tpu.memory_space<vmem>>, %arg5: memref<2x32x32xbf16, #tpu.memory_space<vmem>>, %arg6: memref<2x1x32xf32, #tpu.memory_space<vmem>>, %arg7: memref<2x32x32xbf16, #tpu.memory_space<vmem>>, %arg8: memref<2x1x32xf32, #tpu.memory_space<vmem>>, %arg9: memref<2x32x32xbf16, #tpu.memory_space<vmem>>, %arg10: memref<2x1x32xf32, #tpu.memory_space<vmem>>, %arg11: memref<2x32x32xbf16, #tpu.memory_space<vmem>>, %arg12: memref<2x1x32xf32, #tpu.memory_space<vmem>>, %arg13: memref<2x1x32xf32, #tpu.memory_space<vmem>>, %arg14: memref<2x1x32xf32, #tpu.memory_space<vmem>>, %arg15: memref<2x32x64xbf16, #tpu.memory_space<vmem>>, %arg16: memref<2x1x64xf32, #tpu.memory_space<vmem>>, %arg17: memref<2x64x32xbf16, #tpu.memory_space<vmem>>, %arg18: memref<2x1x32xf32, #tpu.memory_space<vmem>>, %arg19: memref<2x1x32xf32, #tpu.memory_space<vmem>>, %arg20: memref<2x1x32xf32, #tpu.memory_space<vmem>>, %arg21: memref<1x1x32xf32, #tpu.memory_space<vmem>>) attributes {dimension_semantics = [#tpu.dimension_semantics<parallel>], iteration_bounds = array<i64: 2>, scalar_prefetch = 0 : i64, scratch_operands = 0 : i64, tpu.core_type = #tpu.core_type<tc>, window_params = [{transform_indices = @transform_0, window_bounds = array<i64: 1, 8, 32>}, {transform_indices = @transform_1, window_bounds = array<i64: 1, 1, 8>}, {pipeline_mode = #tpu.pipeline_mode<synchronous>, transform_indices = @transform_2, window_bounds = array<i64: 1, 32>}, {pipeline_mode = #tpu.pipeline_mode<synchronous>, transform_indices = @transform_3, window_bounds = array<i64: 1, 32>}, {pipeline_mode = #tpu.pipeline_mode<synchronous>, transform_indices = @transform_4, window_bounds = array<i64: 2, 32, 32>}, {pipeline_mode = #tpu.pipeline_mode<synchronous>, transform_indices = @transform_5, window_bounds = array<i64: 2, 1, 32>}, {pipeline_mode = #tpu.pipeline_mode<synchronous>, transform_indices = @transform_6, window_bounds = array<i64: 2, 32, 32>}, {pipeline_mode = #tpu.pipeline_mode<synchronous>, transform_indices = @transform_7, window_bounds = array<i64: 2, 1, 32>}, {pipeline_mode = #tpu.pipeline_mode<synchronous>, transform_indices = @transform_8, window_bounds = array<i64: 2, 32, 32>}, {pipeline_mode = #tpu.pipeline_mode<synchronous>, transform_indices = @transform_9, window_bounds = array<i64: 2, 1, 32>}, {pipeline_mode = #tpu.pipeline_mode<synchronous>, transform_indices = @transform_10, window_bounds = array<i64: 2, 32, 32>}, {pipeline_mode = #tpu.pipeline_mode<synchronous>, transform_indices = @transform_11, window_bounds = array<i64: 2, 1, 32>}, {pipeline_mode = #tpu.pipeline_mode<synchronous>, transform_indices = @transform_12, window_bounds = array<i64: 2, 1, 32>}, {pipeline_mode = #tpu.pipeline_mode<synchronous>, transform_indices = @transform_13, window_bounds = array<i64: 2, 1, 32>}, {pipeline_mode = #tpu.pipeline_mode<synchronous>, transform_indices = @transform_14, window_bounds = array<i64: 2, 32, 64>}, {pipeline_mode = #tpu.pipeline_mode<synchronous>, transform_indices = @transform_15, window_bounds = array<i64: 2, 1, 64>}, {pipeline_mode = #tpu.pipeline_mode<synchronous>, transform_indices = @transform_16, window_bounds = array<i64: 2, 64, 32>}, {pipeline_mode = #tpu.pipeline_mode<synchronous>, transform_indices = @transform_17, window_bounds = array<i64: 2, 1, 32>}, {pipeline_mode = #tpu.pipeline_mode<synchronous>, transform_indices = @transform_18, window_bounds = array<i64: 2, 1, 32>}, {pipeline_mode = #tpu.pipeline_mode<synchronous>, transform_indices = @transform_19, window_bounds = array<i64: 2, 1, 32>}, {transform_indices = @transform_20, window_bounds = array<i64: 1, 1, 32>}]} {
    %c0 = arith.constant 0 : index
    %c0_0 = arith.constant 0 : index
    %c0_1 = arith.constant 0 : index
    %0 = vector.load %arg1[%c0, %c0_0, %c0_1] : memref<1x8x32xf32, #tpu.memory_space<vmem>>, vector<1x8x32xf32>
    %1 = vector.shape_cast %0 : vector<1x8x32xf32> to vector<8x32xf32>
    %c0_2 = arith.constant 0 : index
    %c0_3 = arith.constant 0 : index
    %2 = vector.load %arg3[%c0_2, %c0_3] : memref<1x32xf32, #tpu.memory_space<vmem>>, vector<1x32xf32>
    %c0_4 = arith.constant 0 : index
    %c0_5 = arith.constant 0 : index
    %3 = vector.load %arg4[%c0_4, %c0_5] : memref<1x32xf32, #tpu.memory_space<vmem>>, vector<1x32xf32>
    %cst = arith.constant dense<0.000000e+00> : vector<8xf32>
    %4 = vector.multi_reduction <add>, %1, %cst [1] : vector<8x32xf32> to vector<8xf32>
    %5 = vector.shape_cast %4 : vector<8xf32> to vector<8x1xf32>
    %cst_6 = arith.constant 3.200000e+01 : f32
    %6 = vector.broadcast %cst_6 : f32 to vector<8x1xf32>
    %7 = arith.divf %5, %6 : vector<8x1xf32>
    %8 = vector.broadcast %7 : vector<8x1xf32> to vector<8x32xf32>
    %9 = arith.subf %1, %8 : vector<8x32xf32>
    %10 = arith.mulf %9, %9 : vector<8x32xf32>
    %cst_7 = arith.constant dense<0.000000e+00> : vector<8xf32>
    %11 = vector.multi_reduction <add>, %10, %cst_7 [1] : vector<8x32xf32> to vector<8xf32>
    %12 = vector.shape_cast %11 : vector<8xf32> to vector<8x1xf32>
    %cst_8 = arith.constant 3.200000e+01 : f32
    %13 = vector.broadcast %cst_8 : f32 to vector<8x1xf32>
    %14 = arith.divf %12, %13 : vector<8x1xf32>
    %15 = vector.broadcast %7 : vector<8x1xf32> to vector<8x32xf32>
    %16 = arith.subf %1, %15 : vector<8x32xf32>
    %cst_9 = arith.constant 9.99999996E-13 : f32
    %17 = vector.broadcast %cst_9 : f32 to vector<8x1xf32>
    %18 = arith.addf %14, %17 : vector<8x1xf32>
    %19 = math.rsqrt %18 : vector<8x1xf32>
    %20 = vector.broadcast %19 : vector<8x1xf32> to vector<8x32xf32>
    %21 = arith.mulf %16, %20 : vector<8x32xf32>
    %22 = vector.broadcast %2 : vector<1x32xf32> to vector<8x32xf32>
    %23 = arith.mulf %21, %22 : vector<8x32xf32>
    %24 = vector.broadcast %3 : vector<1x32xf32> to vector<8x32xf32>
    %25 = arith.addf %23, %24 : vector<8x32xf32>
    %c0_10 = arith.constant 0 : index
    %c0_11 = arith.constant 0 : index
    %c0_12 = arith.constant 0 : index
    %26 = vector.load %arg2[%c0_10, %c0_11, %c0_12] : memref<1x1x8xf32, #tpu.memory_space<vmem>>, vector<1x1x8xf32>
    %27 = vector.shape_cast %26 : vector<1x1x8xf32> to vector<1x8xf32>
    %c0_13 = arith.constant 0 : index
    %c0_14 = arith.constant 0 : index
    %c0_15 = arith.constant 0 : index
    %28 = vector.load %arg5[%c0_13, %c0_14, %c0_15] : memref<2x32x32xbf16, #tpu.memory_space<vmem>>, vector<1x32x32xbf16>
    %29 = vector.shape_cast %28 : vector<1x32x32xbf16> to vector<32x32xbf16>
    %30 = arith.truncf %25 : vector<8x32xf32> to vector<8x32xbf16>
    %cst_16 = arith.constant dense<0.000000e+00> : vector<8x32xf32>
    %31 = tpu.matmul %30, %29, %cst_16 {dimension_numbers = #tpu.dot_dimension_numbers<[1], [0], [0], [1], [0, 0, 1, 1], [], []>} : vector<8x32xbf16>, vector<32x32xbf16>, vector<8x32xf32> -> vector<8x32xf32>
    %c0_17 = arith.constant 0 : index
    %c0_18 = arith.constant 0 : index
    %c0_19 = arith.constant 0 : index
    %32 = vector.load %arg6[%c0_17, %c0_18, %c0_19] : memref<2x1x32xf32, #tpu.memory_space<vmem>>, vector<1x1x32xf32>
    %33 = vector.shape_cast %32 : vector<1x1x32xf32> to vector<1x32xf32>
    %34 = vector.broadcast %33 : vector<1x32xf32> to vector<8x32xf32>
    %35 = arith.addf %31, %34 : vector<8x32xf32>
    %c0_20 = arith.constant 0 : index
    %c0_21 = arith.constant 0 : index
    %c0_22 = arith.constant 0 : index
    %36 = vector.load %arg7[%c0_20, %c0_21, %c0_22] : memref<2x32x32xbf16, #tpu.memory_space<vmem>>, vector<1x32x32xbf16>
    %37 = vector.shape_cast %36 : vector<1x32x32xbf16> to vector<32x32xbf16>
    %38 = arith.truncf %25 : vector<8x32xf32> to vector<8x32xbf16>
    %cst_23 = arith.constant dense<0.000000e+00> : vector<8x32xf32>
    %39 = tpu.matmul %38, %37, %cst_23 {dimension_numbers = #tpu.dot_dimension_numbers<[1], [0], [0], [1], [0, 0, 1, 1], [], []>} : vector<8x32xbf16>, vector<32x32xbf16>, vector<8x32xf32> -> vector<8x32xf32>
    %c0_24 = arith.constant 0 : index
    %c0_25 = arith.constant 0 : index
    %c0_26 = arith.constant 0 : index
    %40 = vector.load %arg8[%c0_24, %c0_25, %c0_26] : memref<2x1x32xf32, #tpu.memory_space<vmem>>, vector<1x1x32xf32>
    %41 = vector.shape_cast %40 : vector<1x1x32xf32> to vector<1x32xf32>
    %42 = vector.broadcast %41 : vector<1x32xf32> to vector<8x32xf32>
    %43 = arith.addf %39, %42 : vector<8x32xf32>
    %c0_27 = arith.constant 0 : index
    %c0_28 = arith.constant 0 : index
    %c0_29 = arith.constant 0 : index
    %44 = vector.load %arg9[%c0_27, %c0_28, %c0_29] : memref<2x32x32xbf16, #tpu.memory_space<vmem>>, vector<1x32x32xbf16>
    %45 = vector.shape_cast %44 : vector<1x32x32xbf16> to vector<32x32xbf16>
    %46 = arith.truncf %25 : vector<8x32xf32> to vector<8x32xbf16>
    %cst_30 = arith.constant dense<0.000000e+00> : vector<8x32xf32>
    %47 = tpu.matmul %46, %45, %cst_30 {dimension_numbers = #tpu.dot_dimension_numbers<[1], [0], [0], [1], [0, 0, 1, 1], [], []>} : vector<8x32xbf16>, vector<32x32xbf16>, vector<8x32xf32> -> vector<8x32xf32>
    %c0_31 = arith.constant 0 : index
    %c0_32 = arith.constant 0 : index
    %c0_33 = arith.constant 0 : index
    %48 = vector.load %arg10[%c0_31, %c0_32, %c0_33] : memref<2x1x32xf32, #tpu.memory_space<vmem>>, vector<1x1x32xf32>
    %49 = vector.shape_cast %48 : vector<1x1x32xf32> to vector<1x32xf32>
    %50 = vector.broadcast %49 : vector<1x32xf32> to vector<8x32xf32>
    %51 = arith.addf %47, %50 : vector<8x32xf32>
    %52 = vector.shape_cast %35 : vector<8x32xf32> to vector<8x4x8xf32>
    %53 = tpu.transpose %52, [1, 0, 2] : vector<8x4x8xf32> -> vector<4x8x8xf32>
    %54 = arith.truncf %53 : vector<4x8x8xf32> to vector<4x8x8xbf16>
    %55 = vector.shape_cast %43 : vector<8x32xf32> to vector<8x4x8xf32>
    %56 = tpu.transpose %55, [1, 0, 2] : vector<8x4x8xf32> -> vector<4x8x8xf32>
    %57 = arith.truncf %56 : vector<4x8x8xf32> to vector<4x8x8xbf16>
    %58 = vector.shape_cast %51 : vector<8x32xf32> to vector<8x4x8xf32>
    %59 = tpu.transpose %58, [1, 0, 2] : vector<8x4x8xf32> -> vector<4x8x8xf32>
    %60 = arith.truncf %59 : vector<4x8x8xf32> to vector<4x8x8xbf16>
    "tpu.trace_start"() <{level = 10 : i32, message = "nsd,ntd->nst"}> : () -> ()
    %cst_34 = arith.constant dense<0.000000e+00> : vector<4x8x8xf32>
    %61 = tpu.matmul %54, %57, %cst_34 {dimension_numbers = #tpu.dot_dimension_numbers<[2], [2], [1], [1], [0, 0, 0, 1, 1, 1], [0], [0]>} : vector<4x8x8xbf16>, vector<4x8x8xbf16>, vector<4x8x8xf32> -> vector<4x8x8xf32>
    "tpu.trace_stop"() : () -> ()
    %cst_35 = arith.constant 0.353553385 : f32
    %62 = vector.broadcast %cst_35 : f32 to vector<4x8x8xf32>
    %63 = arith.mulf %61, %62 : vector<4x8x8xf32>
    %64 = vector.shape_cast %27 : vector<1x8xf32> to vector<1x1x8xf32>
    %65 = vector.broadcast %64 : vector<1x1x8xf32> to vector<4x8x8xf32>
    %66 = arith.addf %63, %65 : vector<4x8x8xf32>
    %cst_36 = arith.constant dense<0xFF800000> : vector<4x8xf32>
    %67 = vector.multi_reduction <maximumf>, %66, %cst_36 [2] : vector<4x8x8xf32> to vector<4x8xf32>
    %68 = vector.shape_cast %67 : vector<4x8xf32> to vector<4x8x1xf32>
    %69 = vector.broadcast %68 : vector<4x8x1xf32> to vector<4x8x8xf32>
    %70 = arith.subf %66, %69 : vector<4x8x8xf32>
    %71 = math.exp %70 : vector<4x8x8xf32>
    %cst_37 = arith.constant dense<0.000000e+00> : vector<4x8xf32>
    %72 = vector.multi_reduction <add>, %71, %cst_37 [2] : vector<4x8x8xf32> to vector<4x8xf32>
    %73 = vector.shape_cast %72 : vector<4x8xf32> to vector<4x8x1xf32>
    %74 = tpu.reciprocal %73 {approx = true} : vector<4x8x1xf32> -> vector<4x8x1xf32>
    %75 = vector.broadcast %74 : vector<4x8x1xf32> to vector<4x8x8xf32>
    %76 = arith.mulf %71, %75 : vector<4x8x8xf32>
    %77 = arith.truncf %76 : vector<4x8x8xf32> to vector<4x8x8xbf16>
    "tpu.trace_start"() <{level = 10 : i32, message = "nst,ntd->nsd"}> : () -> ()
    %cst_38 = arith.constant dense<0.000000e+00> : vector<4x8x8xf32>
    %78 = tpu.matmul %77, %60, %cst_38 {dimension_numbers = #tpu.dot_dimension_numbers<[2], [1], [1], [2], [0, 0, 0, 1, 1, 2], [0], [0]>} : vector<4x8x8xbf16>, vector<4x8x8xbf16>, vector<4x8x8xf32> -> vector<4x8x8xf32>
    "tpu.trace_stop"() : () -> ()
    %79 = tpu.transpose %78, [1, 0, 2] : vector<4x8x8xf32> -> vector<8x4x8xf32>
    %80 = vector.shape_cast %79 : vector<8x4x8xf32> to vector<8x32xf32>
    %c0_39 = arith.constant 0 : index
    %c0_40 = arith.constant 0 : index
    %c0_41 = arith.constant 0 : index
    %81 = vector.load %arg11[%c0_39, %c0_40, %c0_41] : memref<2x32x32xbf16, #tpu.memory_space<vmem>>, vector<1x32x32xbf16>
    %82 = vector.shape_cast %81 : vector<1x32x32xbf16> to vector<32x32xbf16>
    %83 = arith.truncf %80 : vector<8x32xf32> to vector<8x32xbf16>
    %cst_42 = arith.constant dense<0.000000e+00> : vector<8x32xf32>
    %84 = tpu.matmul %83, %82, %cst_42 {dimension_numbers = #tpu.dot_dimension_numbers<[1], [0], [0], [1], [0, 0, 1, 1], [], []>} : vector<8x32xbf16>, vector<32x32xbf16>, vector<8x32xf32> -> vector<8x32xf32>
    %c0_43 = arith.constant 0 : index
    %c0_44 = arith.constant 0 : index
    %c0_45 = arith.constant 0 : index
    %85 = vector.load %arg12[%c0_43, %c0_44, %c0_45] : memref<2x1x32xf32, #tpu.memory_space<vmem>>, vector<1x1x32xf32>
    %86 = vector.shape_cast %85 : vector<1x1x32xf32> to vector<1x32xf32>
    %87 = vector.broadcast %86 : vector<1x32xf32> to vector<8x32xf32>
    %88 = arith.addf %84, %87 : vector<8x32xf32>
    %89 = arith.addf %25, %88 : vector<8x32xf32>
    %c0_46 = arith.constant 0 : index
    %c0_47 = arith.constant 0 : index
    %c0_48 = arith.constant 0 : index
    %90 = vector.load %arg13[%c0_46, %c0_47, %c0_48] : memref<2x1x32xf32, #tpu.memory_space<vmem>>, vector<1x1x32xf32>
    %91 = vector.shape_cast %90 : vector<1x1x32xf32> to vector<1x32xf32>
    %c0_49 = arith.constant 0 : index
    %c0_50 = arith.constant 0 : index
    %c0_51 = arith.constant 0 : index
    %92 = vector.load %arg14[%c0_49, %c0_50, %c0_51] : memref<2x1x32xf32, #tpu.memory_space<vmem>>, vector<1x1x32xf32>
    %93 = vector.shape_cast %92 : vector<1x1x32xf32> to vector<1x32xf32>
    %cst_52 = arith.constant dense<0.000000e+00> : vector<8xf32>
    %94 = vector.multi_reduction <add>, %89, %cst_52 [1] : vector<8x32xf32> to vector<8xf32>
    %95 = vector.shape_cast %94 : vector<8xf32> to vector<8x1xf32>
    %cst_53 = arith.constant 3.200000e+01 : f32
    %96 = vector.broadcast %cst_53 : f32 to vector<8x1xf32>
    %97 = arith.divf %95, %96 : vector<8x1xf32>
    %98 = vector.broadcast %97 : vector<8x1xf32> to vector<8x32xf32>
    %99 = arith.subf %89, %98 : vector<8x32xf32>
    %100 = arith.mulf %99, %99 : vector<8x32xf32>
    %cst_54 = arith.constant dense<0.000000e+00> : vector<8xf32>
    %101 = vector.multi_reduction <add>, %100, %cst_54 [1] : vector<8x32xf32> to vector<8xf32>
    %102 = vector.shape_cast %101 : vector<8xf32> to vector<8x1xf32>
    %cst_55 = arith.constant 3.200000e+01 : f32
    %103 = vector.broadcast %cst_55 : f32 to vector<8x1xf32>
    %104 = arith.divf %102, %103 : vector<8x1xf32>
    %105 = vector.broadcast %97 : vector<8x1xf32> to vector<8x32xf32>
    %106 = arith.subf %89, %105 : vector<8x32xf32>
    %cst_56 = arith.constant 9.99999996E-13 : f32
    %107 = vector.broadcast %cst_56 : f32 to vector<8x1xf32>
    %108 = arith.addf %104, %107 : vector<8x1xf32>
    %109 = math.rsqrt %108 : vector<8x1xf32>
    %110 = vector.broadcast %109 : vector<8x1xf32> to vector<8x32xf32>
    %111 = arith.mulf %106, %110 : vector<8x32xf32>
    %112 = vector.broadcast %91 : vector<1x32xf32> to vector<8x32xf32>
    %113 = arith.mulf %111, %112 : vector<8x32xf32>
    %114 = vector.broadcast %93 : vector<1x32xf32> to vector<8x32xf32>
    %115 = arith.addf %113, %114 : vector<8x32xf32>
    %c0_57 = arith.constant 0 : index
    %c0_58 = arith.constant 0 : index
    %c0_59 = arith.constant 0 : index
    %116 = vector.load %arg15[%c0_57, %c0_58, %c0_59] : memref<2x32x64xbf16, #tpu.memory_space<vmem>>, vector<1x32x64xbf16>
    %117 = vector.shape_cast %116 : vector<1x32x64xbf16> to vector<32x64xbf16>
    %118 = arith.truncf %115 : vector<8x32xf32> to vector<8x32xbf16>
    %cst_60 = arith.constant dense<0.000000e+00> : vector<8x64xf32>
    %119 = tpu.matmul %118, %117, %cst_60 {dimension_numbers = #tpu.dot_dimension_numbers<[1], [0], [0], [1], [0, 0, 1, 1], [], []>} : vector<8x32xbf16>, vector<32x64xbf16>, vector<8x64xf32> -> vector<8x64xf32>
    %c0_61 = arith.constant 0 : index
    %c0_62 = arith.constant 0 : index
    %c0_63 = arith.constant 0 : index
    %120 = vector.load %arg16[%c0_61, %c0_62, %c0_63] : memref<2x1x64xf32, #tpu.memory_space<vmem>>, vector<1x1x64xf32>
    %121 = vector.shape_cast %120 : vector<1x1x64xf32> to vector<1x64xf32>
    %122 = vector.broadcast %121 : vector<1x64xf32> to vector<8x64xf32>
    %123 = arith.addf %119, %122 : vector<8x64xf32>
    %124 = arith.mulf %123, %123 : vector<8x64xf32>
    %125 = arith.mulf %123, %124 : vector<8x64xf32>
    %cst_64 = arith.constant 4.471500e-02 : f32
    %126 = vector.broadcast %cst_64 : f32 to vector<8x64xf32>
    %127 = arith.mulf %126, %125 : vector<8x64xf32>
    %128 = arith.addf %123, %127 : vector<8x64xf32>
    %cst_65 = arith.constant 0.797884583 : f32
    %129 = vector.broadcast %cst_65 : f32 to vector<8x64xf32>
    %130 = arith.mulf %129, %128 : vector<8x64xf32>
    %131 = math.tanh %130 : vector<8x64xf32>
    %cst_66 = arith.constant 1.000000e+00 : f32
    %132 = vector.broadcast %cst_66 : f32 to vector<8x64xf32>
    %133 = arith.addf %132, %131 : vector<8x64xf32>
    %cst_67 = arith.constant 5.000000e-01 : f32
    %134 = vector.broadcast %cst_67 : f32 to vector<8x64xf32>
    %135 = arith.mulf %134, %133 : vector<8x64xf32>
    %136 = arith.mulf %123, %135 : vector<8x64xf32>
    %c0_68 = arith.constant 0 : index
    %c0_69 = arith.constant 0 : index
    %c0_70 = arith.constant 0 : index
    %137 = vector.load %arg17[%c0_68, %c0_69, %c0_70] : memref<2x64x32xbf16, #tpu.memory_space<vmem>>, vector<1x64x32xbf16>
    %138 = vector.shape_cast %137 : vector<1x64x32xbf16> to vector<64x32xbf16>
    %139 = arith.truncf %136 : vector<8x64xf32> to vector<8x64xbf16>
    %cst_71 = arith.constant dense<0.000000e+00> : vector<8x32xf32>
    %140 = tpu.matmul %139, %138, %cst_71 {dimension_numbers = #tpu.dot_dimension_numbers<[1], [0], [0], [1], [0, 0, 1, 1], [], []>} : vector<8x64xbf16>, vector<64x32xbf16>, vector<8x32xf32> -> vector<8x32xf32>
    %c0_72 = arith.constant 0 : index
    %c0_73 = arith.constant 0 : index
    %c0_74 = arith.constant 0 : index
    %141 = vector.load %arg18[%c0_72, %c0_73, %c0_74] : memref<2x1x32xf32, #tpu.memory_space<vmem>>, vector<1x1x32xf32>
    %142 = vector.shape_cast %141 : vector<1x1x32xf32> to vector<1x32xf32>
    %143 = vector.broadcast %142 : vector<1x32xf32> to vector<8x32xf32>
    %144 = arith.addf %140, %143 : vector<8x32xf32>
    %145 = arith.addf %115, %144 : vector<8x32xf32>
    %c0_75 = arith.constant 0 : index
    %c0_76 = arith.constant 0 : index
    %c0_77 = arith.constant 0 : index
    %146 = vector.load %arg19[%c0_75, %c0_76, %c0_77] : memref<2x1x32xf32, #tpu.memory_space<vmem>>, vector<1x1x32xf32>
    %147 = vector.shape_cast %146 : vector<1x1x32xf32> to vector<1x32xf32>
    %c0_78 = arith.constant 0 : index
    %c0_79 = arith.constant 0 : index
    %c0_80 = arith.constant 0 : index
    %148 = vector.load %arg20[%c0_78, %c0_79, %c0_80] : memref<2x1x32xf32, #tpu.memory_space<vmem>>, vector<1x1x32xf32>
    %149 = vector.shape_cast %148 : vector<1x1x32xf32> to vector<1x32xf32>
    %cst_81 = arith.constant dense<0.000000e+00> : vector<8xf32>
    %150 = vector.multi_reduction <add>, %145, %cst_81 [1] : vector<8x32xf32> to vector<8xf32>
    %151 = vector.shape_cast %150 : vector<8xf32> to vector<8x1xf32>
    %cst_82 = arith.constant 3.200000e+01 : f32
    %152 = vector.broadcast %cst_82 : f32 to vector<8x1xf32>
    %153 = arith.divf %151, %152 : vector<8x1xf32>
    %154 = vector.broadcast %153 : vector<8x1xf32> to vector<8x32xf32>
    %155 = arith.subf %145, %154 : vector<8x32xf32>
    %156 = arith.mulf %155, %155 : vector<8x32xf32>
    %cst_83 = arith.constant dense<0.000000e+00> : vector<8xf32>
    %157 = vector.multi_reduction <add>, %156, %cst_83 [1] : vector<8x32xf32> to vector<8xf32>
    %158 = vector.shape_cast %157 : vector<8xf32> to vector<8x1xf32>
    %cst_84 = arith.constant 3.200000e+01 : f32
    %159 = vector.broadcast %cst_84 : f32 to vector<8x1xf32>
    %160 = arith.divf %158, %159 : vector<8x1xf32>
    %161 = vector.broadcast %153 : vector<8x1xf32> to vector<8x32xf32>
    %162 = arith.subf %145, %161 : vector<8x32xf32>
    %cst_85 = arith.constant 9.99999996E-13 : f32
    %163 = vector.broadcast %cst_85 : f32 to vector<8x1xf32>
    %164 = arith.addf %160, %163 : vector<8x1xf32>
    %165 = math.rsqrt %164 : vector<8x1xf32>
    %166 = vector.broadcast %165 : vector<8x1xf32> to vector<8x32xf32>
    %167 = arith.mulf %162, %166 : vector<8x32xf32>
    %168 = vector.broadcast %147 : vector<1x32xf32> to vector<8x32xf32>
    %169 = arith.mulf %167, %168 : vector<8x32xf32>
    %170 = vector.broadcast %149 : vector<1x32xf32> to vector<8x32xf32>
    %171 = arith.addf %169, %170 : vector<8x32xf32>
    %c1 = arith.constant 1 : index
    %c0_86 = arith.constant 0 : index
    %c0_87 = arith.constant 0 : index
    %172 = vector.load %arg5[%c1, %c0_86, %c0_87] : memref<2x32x32xbf16, #tpu.memory_space<vmem>>, vector<1x32x32xbf16>
    %173 = vector.shape_cast %172 : vector<1x32x32xbf16> to vector<32x32xbf16>
    %174 = arith.truncf %171 : vector<8x32xf32> to vector<8x32xbf16>
    %cst_88 = arith.constant dense<0.000000e+00> : vector<8x32xf32>
    %175 = tpu.matmul %174, %173, %cst_88 {dimension_numbers = #tpu.dot_dimension_numbers<[1], [0], [0], [1], [0, 0, 1, 1], [], []>} : vector<8x32xbf16>, vector<32x32xbf16>, vector<8x32xf32> -> vector<8x32xf32>
    %c1_89 = arith.constant 1 : index
    %c0_90 = arith.constant 0 : index
    %c0_91 = arith.constant 0 : index
    %176 = vector.load %arg6[%c1_89, %c0_90, %c0_91] : memref<2x1x32xf32, #tpu.memory_space<vmem>>, vector<1x1x32xf32>
    %177 = vector.shape_cast %176 : vector<1x1x32xf32> to vector<1x32xf32>
    %178 = vector.broadcast %177 : vector<1x32xf32> to vector<8x32xf32>
    %179 = arith.addf %175, %178 : vector<8x32xf32>
    %c1_92 = arith.constant 1 : index
    %c0_93 = arith.constant 0 : index
    %c0_94 = arith.constant 0 : index
    %180 = vector.load %arg7[%c1_92, %c0_93, %c0_94] : memref<2x32x32xbf16, #tpu.memory_space<vmem>>, vector<1x32x32xbf16>
    %181 = vector.shape_cast %180 : vector<1x32x32xbf16> to vector<32x32xbf16>
    %182 = arith.truncf %171 : vector<8x32xf32> to vector<8x32xbf16>
    %cst_95 = arith.constant dense<0.000000e+00> : vector<8x32xf32>
    %183 = tpu.matmul %182, %181, %cst_95 {dimension_numbers = #tpu.dot_dimension_numbers<[1], [0], [0], [1], [0, 0, 1, 1], [], []>} : vector<8x32xbf16>, vector<32x32xbf16>, vector<8x32xf32> -> vector<8x32xf32>
    %c1_96 = arith.constant 1 : index
    %c0_97 = arith.constant 0 : index
    %c0_98 = arith.constant 0 : index
    %184 = vector.load %arg8[%c1_96, %c0_97, %c0_98] : memref<2x1x32xf32, #tpu.memory_space<vmem>>, vector<1x1x32xf32>
    %185 = vector.shape_cast %184 : vector<1x1x32xf32> to vector<1x32xf32>
    %186 = vector.broadcast %185 : vector<1x32xf32> to vector<8x32xf32>
    %187 = arith.addf %183, %186 : vector<8x32xf32>
    %c1_99 = arith.constant 1 : index
    %c0_100 = arith.constant 0 : index
    %c0_101 = arith.constant 0 : index
    %188 = vector.load %arg9[%c1_99, %c0_100, %c0_101] : memref<2x32x32xbf16, #tpu.memory_space<vmem>>, vector<1x32x32xbf16>
    %189 = vector.shape_cast %188 : vector<1x32x32xbf16> to vector<32x32xbf16>
    %190 = arith.truncf %171 : vector<8x32xf32> to vector<8x32xbf16>
    %cst_102 = arith.constant dense<0.000000e+00> : vector<8x32xf32>
    %191 = tpu.matmul %190, %189, %cst_102 {dimension_numbers = #tpu.dot_dimension_numbers<[1], [0], [0], [1], [0, 0, 1, 1], [], []>} : vector<8x32xbf16>, vector<32x32xbf16>, vector<8x32xf32> -> vector<8x32xf32>
    %c1_103 = arith.constant 1 : index
    %c0_104 = arith.constant 0 : index
    %c0_105 = arith.constant 0 : index
    %192 = vector.load %arg10[%c1_103, %c0_104, %c0_105] : memref<2x1x32xf32, #tpu.memory_space<vmem>>, vector<1x1x32xf32>
    %193 = vector.shape_cast %192 : vector<1x1x32xf32> to vector<1x32xf32>
    %194 = vector.broadcast %193 : vector<1x32xf32> to vector<8x32xf32>
    %195 = arith.addf %191, %194 : vector<8x32xf32>
    %196 = vector.shape_cast %179 : vector<8x32xf32> to vector<8x4x8xf32>
    %197 = tpu.transpose %196, [1, 0, 2] : vector<8x4x8xf32> -> vector<4x8x8xf32>
    %198 = arith.truncf %197 : vector<4x8x8xf32> to vector<4x8x8xbf16>
    %199 = vector.shape_cast %187 : vector<8x32xf32> to vector<8x4x8xf32>
    %200 = tpu.transpose %199, [1, 0, 2] : vector<8x4x8xf32> -> vector<4x8x8xf32>
    %201 = arith.truncf %200 : vector<4x8x8xf32> to vector<4x8x8xbf16>
    %202 = vector.shape_cast %195 : vector<8x32xf32> to vector<8x4x8xf32>
    %203 = tpu.transpose %202, [1, 0, 2] : vector<8x4x8xf32> -> vector<4x8x8xf32>
    %204 = arith.truncf %203 : vector<4x8x8xf32> to vector<4x8x8xbf16>
    "tpu.trace_start"() <{level = 10 : i32, message = "nsd,ntd->nst"}> : () -> ()
    %cst_106 = arith.constant dense<0.000000e+00> : vector<4x8x8xf32>
    %205 = tpu.matmul %198, %201, %cst_106 {dimension_numbers = #tpu.dot_dimension_numbers<[2], [2], [1], [1], [0, 0, 0, 1, 1, 1], [0], [0]>} : vector<4x8x8xbf16>, vector<4x8x8xbf16>, vector<4x8x8xf32> -> vector<4x8x8xf32>
    "tpu.trace_stop"() : () -> ()
    %cst_107 = arith.constant 0.353553385 : f32
    %206 = vector.broadcast %cst_107 : f32 to vector<4x8x8xf32>
    %207 = arith.mulf %205, %206 : vector<4x8x8xf32>
    %208 = vector.shape_cast %27 : vector<1x8xf32> to vector<1x1x8xf32>
    %209 = vector.broadcast %208 : vector<1x1x8xf32> to vector<4x8x8xf32>
    %210 = arith.addf %207, %209 : vector<4x8x8xf32>
    %cst_108 = arith.constant dense<0xFF800000> : vector<4x8xf32>
    %211 = vector.multi_reduction <maximumf>, %210, %cst_108 [2] : vector<4x8x8xf32> to vector<4x8xf32>
    %212 = vector.shape_cast %211 : vector<4x8xf32> to vector<4x8x1xf32>
    %213 = vector.broadcast %212 : vector<4x8x1xf32> to vector<4x8x8xf32>
    %214 = arith.subf %210, %213 : vector<4x8x8xf32>
    %215 = math.exp %214 : vector<4x8x8xf32>
    %cst_109 = arith.constant dense<0.000000e+00> : vector<4x8xf32>
    %216 = vector.multi_reduction <add>, %215, %cst_109 [2] : vector<4x8x8xf32> to vector<4x8xf32>
    %217 = vector.shape_cast %216 : vector<4x8xf32> to vector<4x8x1xf32>
    %218 = tpu.reciprocal %217 {approx = true} : vector<4x8x1xf32> -> vector<4x8x1xf32>
    %219 = vector.broadcast %218 : vector<4x8x1xf32> to vector<4x8x8xf32>
    %220 = arith.mulf %215, %219 : vector<4x8x8xf32>
    %221 = arith.truncf %220 : vector<4x8x8xf32> to vector<4x8x8xbf16>
    "tpu.trace_start"() <{level = 10 : i32, message = "nst,ntd->nsd"}> : () -> ()
    %cst_110 = arith.constant dense<0.000000e+00> : vector<4x8x8xf32>
    %222 = tpu.matmul %221, %204, %cst_110 {dimension_numbers = #tpu.dot_dimension_numbers<[2], [1], [1], [2], [0, 0, 0, 1, 1, 2], [0], [0]>} : vector<4x8x8xbf16>, vector<4x8x8xbf16>, vector<4x8x8xf32> -> vector<4x8x8xf32>
    "tpu.trace_stop"() : () -> ()
    %223 = tpu.transpose %222, [1, 0, 2] : vector<4x8x8xf32> -> vector<8x4x8xf32>
    %224 = vector.shape_cast %223 : vector<8x4x8xf32> to vector<8x32xf32>
    %c1_111 = arith.constant 1 : index
    %c0_112 = arith.constant 0 : index
    %c0_113 = arith.constant 0 : index
    %225 = vector.load %arg11[%c1_111, %c0_112, %c0_113] : memref<2x32x32xbf16, #tpu.memory_space<vmem>>, vector<1x32x32xbf16>
    %226 = vector.shape_cast %225 : vector<1x32x32xbf16> to vector<32x32xbf16>
    %227 = arith.truncf %224 : vector<8x32xf32> to vector<8x32xbf16>
    %cst_114 = arith.constant dense<0.000000e+00> : vector<8x32xf32>
    %228 = tpu.matmul %227, %226, %cst_114 {dimension_numbers = #tpu.dot_dimension_numbers<[1], [0], [0], [1], [0, 0, 1, 1], [], []>} : vector<8x32xbf16>, vector<32x32xbf16>, vector<8x32xf32> -> vector<8x32xf32>
    %c1_115 = arith.constant 1 : index
    %c0_116 = arith.constant 0 : index
    %c0_117 = arith.constant 0 : index
    %229 = vector.load %arg12[%c1_115, %c0_116, %c0_117] : memref<2x1x32xf32, #tpu.memory_space<vmem>>, vector<1x1x32xf32>
    %230 = vector.shape_cast %229 : vector<1x1x32xf32> to vector<1x32xf32>
    %231 = vector.broadcast %230 : vector<1x32xf32> to vector<8x32xf32>
    %232 = arith.addf %228, %231 : vector<8x32xf32>
    %233 = arith.addf %171, %232 : vector<8x32xf32>
    %c1_118 = arith.constant 1 : index
    %c0_119 = arith.constant 0 : index
    %c0_120 = arith.constant 0 : index
    %234 = vector.load %arg13[%c1_118, %c0_119, %c0_120] : memref<2x1x32xf32, #tpu.memory_space<vmem>>, vector<1x1x32xf32>
    %235 = vector.shape_cast %234 : vector<1x1x32xf32> to vector<1x32xf32>
    %c1_121 = arith.constant 1 : index
    %c0_122 = arith.constant 0 : index
    %c0_123 = arith.constant 0 : index
    %236 = vector.load %arg14[%c1_121, %c0_122, %c0_123] : memref<2x1x32xf32, #tpu.memory_space<vmem>>, vector<1x1x32xf32>
    %237 = vector.shape_cast %236 : vector<1x1x32xf32> to vector<1x32xf32>
    %cst_124 = arith.constant dense<0.000000e+00> : vector<8xf32>
    %238 = vector.multi_reduction <add>, %233, %cst_124 [1] : vector<8x32xf32> to vector<8xf32>
    %239 = vector.shape_cast %238 : vector<8xf32> to vector<8x1xf32>
    %cst_125 = arith.constant 3.200000e+01 : f32
    %240 = vector.broadcast %cst_125 : f32 to vector<8x1xf32>
    %241 = arith.divf %239, %240 : vector<8x1xf32>
    %242 = vector.broadcast %241 : vector<8x1xf32> to vector<8x32xf32>
    %243 = arith.subf %233, %242 : vector<8x32xf32>
    %244 = arith.mulf %243, %243 : vector<8x32xf32>
    %cst_126 = arith.constant dense<0.000000e+00> : vector<8xf32>
    %245 = vector.multi_reduction <add>, %244, %cst_126 [1] : vector<8x32xf32> to vector<8xf32>
    %246 = vector.shape_cast %245 : vector<8xf32> to vector<8x1xf32>
    %cst_127 = arith.constant 3.200000e+01 : f32
    %247 = vector.broadcast %cst_127 : f32 to vector<8x1xf32>
    %248 = arith.divf %246, %247 : vector<8x1xf32>
    %249 = vector.broadcast %241 : vector<8x1xf32> to vector<8x32xf32>
    %250 = arith.subf %233, %249 : vector<8x32xf32>
    %cst_128 = arith.constant 9.99999996E-13 : f32
    %251 = vector.broadcast %cst_128 : f32 to vector<8x1xf32>
    %252 = arith.addf %248, %251 : vector<8x1xf32>
    %253 = math.rsqrt %252 : vector<8x1xf32>
    %254 = vector.broadcast %253 : vector<8x1xf32> to vector<8x32xf32>
    %255 = arith.mulf %250, %254 : vector<8x32xf32>
    %256 = vector.broadcast %235 : vector<1x32xf32> to vector<8x32xf32>
    %257 = arith.mulf %255, %256 : vector<8x32xf32>
    %258 = vector.broadcast %237 : vector<1x32xf32> to vector<8x32xf32>
    %259 = arith.addf %257, %258 : vector<8x32xf32>
    %c1_129 = arith.constant 1 : index
    %c0_130 = arith.constant 0 : index
    %c0_131 = arith.constant 0 : index
    %260 = vector.load %arg15[%c1_129, %c0_130, %c0_131] : memref<2x32x64xbf16, #tpu.memory_space<vmem>>, vector<1x32x64xbf16>
    %261 = vector.shape_cast %260 : vector<1x32x64xbf16> to vector<32x64xbf16>
    %262 = arith.truncf %259 : vector<8x32xf32> to vector<8x32xbf16>
    %cst_132 = arith.constant dense<0.000000e+00> : vector<8x64xf32>
    %263 = tpu.matmul %262, %261, %cst_132 {dimension_numbers = #tpu.dot_dimension_numbers<[1], [0], [0], [1], [0, 0, 1, 1], [], []>} : vector<8x32xbf16>, vector<32x64xbf16>, vector<8x64xf32> -> vector<8x64xf32>
    %c1_133 = arith.constant 1 : index
    %c0_134 = arith.constant 0 : index
    %c0_135 = arith.constant 0 : index
    %264 = vector.load %arg16[%c1_133, %c0_134, %c0_135] : memref<2x1x64xf32, #tpu.memory_space<vmem>>, vector<1x1x64xf32>
    %265 = vector.shape_cast %264 : vector<1x1x64xf32> to vector<1x64xf32>
    %266 = vector.broadcast %265 : vector<1x64xf32> to vector<8x64xf32>
    %267 = arith.addf %263, %266 : vector<8x64xf32>
    %268 = arith.mulf %267, %267 : vector<8x64xf32>
    %269 = arith.mulf %267, %268 : vector<8x64xf32>
    %cst_136 = arith.constant 4.471500e-02 : f32
    %270 = vector.broadcast %cst_136 : f32 to vector<8x64xf32>
    %271 = arith.mulf %270, %269 : vector<8x64xf32>
    %272 = arith.addf %267, %271 : vector<8x64xf32>
    %cst_137 = arith.constant 0.797884583 : f32
    %273 = vector.broadcast %cst_137 : f32 to vector<8x64xf32>
    %274 = arith.mulf %273, %272 : vector<8x64xf32>
    %275 = math.tanh %274 : vector<8x64xf32>
    %cst_138 = arith.constant 1.000000e+00 : f32
    %276 = vector.broadcast %cst_138 : f32 to vector<8x64xf32>
    %277 = arith.addf %276, %275 : vector<8x64xf32>
    %cst_139 = arith.constant 5.000000e-01 : f32
    %278 = vector.broadcast %cst_139 : f32 to vector<8x64xf32>
    %279 = arith.mulf %278, %277 : vector<8x64xf32>
    %280 = arith.mulf %267, %279 : vector<8x64xf32>
    %c1_140 = arith.constant 1 : index
    %c0_141 = arith.constant 0 : index
    %c0_142 = arith.constant 0 : index
    %281 = vector.load %arg17[%c1_140, %c0_141, %c0_142] : memref<2x64x32xbf16, #tpu.memory_space<vmem>>, vector<1x64x32xbf16>
    %282 = vector.shape_cast %281 : vector<1x64x32xbf16> to vector<64x32xbf16>
    %283 = arith.truncf %280 : vector<8x64xf32> to vector<8x64xbf16>
    %cst_143 = arith.constant dense<0.000000e+00> : vector<8x32xf32>
    %284 = tpu.matmul %283, %282, %cst_143 {dimension_numbers = #tpu.dot_dimension_numbers<[1], [0], [0], [1], [0, 0, 1, 1], [], []>} : vector<8x64xbf16>, vector<64x32xbf16>, vector<8x32xf32> -> vector<8x32xf32>
    %c1_144 = arith.constant 1 : index
    %c0_145 = arith.constant 0 : index
    %c0_146 = arith.constant 0 : index
    %285 = vector.load %arg18[%c1_144, %c0_145, %c0_146] : memref<2x1x32xf32, #tpu.memory_space<vmem>>, vector<1x1x32xf32>
    %286 = vector.shape_cast %285 : vector<1x1x32xf32> to vector<1x32xf32>
    %287 = vector.broadcast %286 : vector<1x32xf32> to vector<8x32xf32>
    %288 = arith.addf %284, %287 : vector<8x32xf32>
    %289 = arith.addf %259, %288 : vector<8x32xf32>
    %c1_147 = arith.constant 1 : index
    %c0_148 = arith.constant 0 : index
    %c0_149 = arith.constant 0 : index
    %290 = vector.load %arg19[%c1_147, %c0_148, %c0_149] : memref<2x1x32xf32, #tpu.memory_space<vmem>>, vector<1x1x32xf32>
    %291 = vector.shape_cast %290 : vector<1x1x32xf32> to vector<1x32xf32>
    %c1_150 = arith.constant 1 : index
    %c0_151 = arith.constant 0 : index
    %c0_152 = arith.constant 0 : index
    %292 = vector.load %arg20[%c1_150, %c0_151, %c0_152] : memref<2x1x32xf32, #tpu.memory_space<vmem>>, vector<1x1x32xf32>
    %293 = vector.shape_cast %292 : vector<1x1x32xf32> to vector<1x32xf32>
    %cst_153 = arith.constant dense<0.000000e+00> : vector<8xf32>
    %294 = vector.multi_reduction <add>, %289, %cst_153 [1] : vector<8x32xf32> to vector<8xf32>
    %295 = vector.shape_cast %294 : vector<8xf32> to vector<8x1xf32>
    %cst_154 = arith.constant 3.200000e+01 : f32
    %296 = vector.broadcast %cst_154 : f32 to vector<8x1xf32>
    %297 = arith.divf %295, %296 : vector<8x1xf32>
    %298 = vector.broadcast %297 : vector<8x1xf32> to vector<8x32xf32>
    %299 = arith.subf %289, %298 : vector<8x32xf32>
    %300 = arith.mulf %299, %299 : vector<8x32xf32>
    %cst_155 = arith.constant dense<0.000000e+00> : vector<8xf32>
    %301 = vector.multi_reduction <add>, %300, %cst_155 [1] : vector<8x32xf32> to vector<8xf32>
    %302 = vector.shape_cast %301 : vector<8xf32> to vector<8x1xf32>
    %cst_156 = arith.constant 3.200000e+01 : f32
    %303 = vector.broadcast %cst_156 : f32 to vector<8x1xf32>
    %304 = arith.divf %302, %303 : vector<8x1xf32>
    %305 = vector.broadcast %297 : vector<8x1xf32> to vector<8x32xf32>
    %306 = arith.subf %289, %305 : vector<8x32xf32>
    %cst_157 = arith.constant 9.99999996E-13 : f32
    %307 = vector.broadcast %cst_157 : f32 to vector<8x1xf32>
    %308 = arith.addf %304, %307 : vector<8x1xf32>
    %309 = math.rsqrt %308 : vector<8x1xf32>
    %310 = vector.broadcast %309 : vector<8x1xf32> to vector<8x32xf32>
    %311 = arith.mulf %306, %310 : vector<8x32xf32>
    %312 = vector.broadcast %291 : vector<1x32xf32> to vector<8x32xf32>
    %313 = arith.mulf %311, %312 : vector<8x32xf32>
    %314 = vector.broadcast %293 : vector<1x32xf32> to vector<8x32xf32>
    %315 = arith.addf %313, %314 : vector<8x32xf32>
    %cst_158 = arith.constant dense<0.000000e+00> : vector<32xf32>
    %316 = vector.multi_reduction <add>, %315, %cst_158 [0] : vector<8x32xf32> to vector<32xf32>
    %317 = vector.shape_cast %316 : vector<32xf32> to vector<1x32xf32>
    %cst_159 = arith.constant 1.250000e-01 : f32
    %318 = vector.broadcast %cst_159 : f32 to vector<1x32xf32>
    %319 = arith.mulf %317, %318 : vector<1x32xf32>
    %320 = vector.shape_cast %319 : vector<1x32xf32> to vector<1x1x32xf32>
    %c0_160 = arith.constant 0 : index
    %c0_161 = arith.constant 0 : index
    %c0_162 = arith.constant 0 : index
    %321 = vector.load %arg21[%c0_160, %c0_161, %c0_162] : memref<1x1x32xf32, #tpu.memory_space<vmem>>, vector<1x1x32xf32>
    tpu.vector_store %arg21[%c0_160, %c0_161, %c0_162], %320 {strides = array<i32>} : memref<1x1x32xf32, #tpu.memory_space<vmem>>, vector<1x1x32xf32>,
    return
  }
  func.func @transform_0(%arg0: i32) -> (i32, i32, i32) {
    %c0_i32 = arith.constant 0 : i32
    %c0_i32_0 = arith.constant 0 : i32
    %c0_i32_1 = arith.constant 0 : i32
    return %arg0, %c0_i32, %c0_i32_0 : i32, i32, i32
  }
  func.func @transform_1(%arg0: i32) -> (i32, i32, i32) {
    %c0_i32 = arith.constant 0 : i32
    %c0_i32_0 = arith.constant 0 : i32
    %c0_i32_1 = arith.constant 0 : i32
    return %arg0, %c0_i32, %c0_i32_0 : i32, i32, i32
  }
  func.func @transform_2(%arg0: i32) -> (i32, i32) {
    %c0_i32 = arith.constant 0 : i32
    %c0_i32_0 = arith.constant 0 : i32
    %c0_i32_1 = arith.constant 0 : i32
    return %c0_i32, %c0_i32_0 : i32, i32
  }
  func.func @transform_3(%arg0: i32) -> (i32, i32) {
    %c0_i32 = arith.constant 0 : i32
    %c0_i32_0 = arith.constant 0 : i32
    %c0_i32_1 = arith.constant 0 : i32
    return %c0_i32, %c0_i32_0 : i32, i32
  }
  func.func @transform_4(%arg0: i32) -> (i32, i32, i32) {
    %c0_i32 = arith.constant 0 : i32
    %c0_i32_0 = arith.constant 0 : i32
    %c0_i32_1 = arith.constant 0 : i32
    %c0_i32_2 = arith.constant 0 : i32
    return %c0_i32, %c0_i32_0, %c0_i32_1 : i32, i32, i32
  }
  func.func @transform_5(%arg0: i32) -> (i32, i32, i32) {
    %c0_i32 = arith.constant 0 : i32
    %c0_i32_0 = arith.constant 0 : i32
    %c0_i32_1 = arith.constant 0 : i32
    %c0_i32_2 = arith.constant 0 : i32
    return %c0_i32, %c0_i32_0, %c0_i32_1 : i32, i32, i32
  }
  func.func @transform_6(%arg0: i32) -> (i32, i32, i32) {
    %c0_i32 = arith.constant 0 : i32
    %c0_i32_0 = arith.constant 0 : i32
    %c0_i32_1 = arith.constant 0 : i32
    %c0_i32_2 = arith.constant 0 : i32
    return %c0_i32, %c0_i32_0, %c0_i32_1 : i32, i32, i32
  }
  func.func @transform_7(%arg0: i32) -> (i32, i32, i32) {
    %c0_i32 = arith.constant 0 : i32
    %c0_i32_0 = arith.constant 0 : i32
    %c0_i32_1 = arith.constant 0 : i32
    %c0_i32_2 = arith.constant 0 : i32
    return %c0_i32, %c0_i32_0, %c0_i32_1 : i32, i32, i32
  }
  func.func @transform_8(%arg0: i32) -> (i32, i32, i32) {
    %c0_i32 = arith.constant 0 : i32
    %c0_i32_0 = arith.constant 0 : i32
    %c0_i32_1 = arith.constant 0 : i32
    %c0_i32_2 = arith.constant 0 : i32
    return %c0_i32, %c0_i32_0, %c0_i32_1 : i32, i32, i32
  }
  func.func @transform_9(%arg0: i32) -> (i32, i32, i32) {
    %c0_i32 = arith.constant 0 : i32
    %c0_i32_0 = arith.constant 0 : i32
    %c0_i32_1 = arith.constant 0 : i32
    %c0_i32_2 = arith.constant 0 : i32
    return %c0_i32, %c0_i32_0, %c0_i32_1 : i32, i32, i32
  }
  func.func @transform_10(%arg0: i32) -> (i32, i32, i32) {
    %c0_i32 = arith.constant 0 : i32
    %c0_i32_0 = arith.constant 0 : i32
    %c0_i32_1 = arith.constant 0 : i32
    %c0_i32_2 = arith.constant 0 : i32
    return %c0_i32, %c0_i32_0, %c0_i32_1 : i32, i32, i32
  }
  func.func @transform_11(%arg0: i32) -> (i32, i32, i32) {
    %c0_i32 = arith.constant 0 : i32
    %c0_i32_0 = arith.constant 0 : i32
    %c0_i32_1 = arith.constant 0 : i32
    %c0_i32_2 = arith.constant 0 : i32
    return %c0_i32, %c0_i32_0, %c0_i32_1 : i32, i32, i32
  }
  func.func @transform_12(%arg0: i32) -> (i32, i32, i32) {
    %c0_i32 = arith.constant 0 : i32
    %c0_i32_0 = arith.constant 0 : i32
    %c0_i32_1 = arith.constant 0 : i32
    %c0_i32_2 = arith.constant 0 : i32
    return %c0_i32, %c0_i32_0, %c0_i32_1 : i32, i32, i32
  }
  func.func @transform_13(%arg0: i32) -> (i32, i32, i32) {
    %c0_i32 = arith.constant 0 : i32
    %c0_i32_0 = arith.constant 0 : i32
    %c0_i32_1 = arith.constant 0 : i32
    %c0_i32_2 = arith.constant 0 : i32
    return %c0_i32, %c0_i32_0, %c0_i32_1 : i32, i32, i32
  }
  func.func @transform_14(%arg0: i32) -> (i32, i32, i32) {
    %c0_i32 = arith.constant 0 : i32
    %c0_i32_0 = arith.constant 0 : i32
    %c0_i32_1 = arith.constant 0 : i32
    %c0_i32_2 = arith.constant 0 : i32
    return %c0_i32, %c0_i32_0, %c0_i32_1 : i32, i32, i32
  }
  func.func @transform_15(%arg0: i32) -> (i32, i32, i32) {
    %c0_i32 = arith.constant 0 : i32
    %c0_i32_0 = arith.constant 0 : i32
    %c0_i32_1 = arith.constant 0 : i32
    %c0_i32_2 = arith.constant 0 : i32
    return %c0_i32, %c0_i32_0, %c0_i32_1 : i32, i32, i32
  }
  func.func @transform_16(%arg0: i32) -> (i32, i32, i32) {
    %c0_i32 = arith.constant 0 : i32
    %c0_i32_0 = arith.constant 0 : i32
    %c0_i32_1 = arith.constant 0 : i32
    %c0_i32_2 = arith.constant 0 : i32
    return %c0_i32, %c0_i32_0, %c0_i32_1 : i32, i32, i32
  }
  func.func @transform_17(%arg0: i32) -> (i32, i32, i32) {
    %c0_i32 = arith.constant 0 : i32
    %c0_i32_0 = arith.constant 0 : i32
    %c0_i32_1 = arith.constant 0 : i32
    %c0_i32_2 = arith.constant 0 : i32
    return %c0_i32, %c0_i32_0, %c0_i32_1 : i32, i32, i32
  }
  func.func @transform_18(%arg0: i32) -> (i32, i32, i32) {
    %c0_i32 = arith.constant 0 : i32
    %c0_i32_0 = arith.constant 0 : i32
    %c0_i32_1 = arith.constant 0 : i32
    %c0_i32_2 = arith.constant 0 : i32
    return %c0_i32, %c0_i32_0, %c0_i32_1 : i32, i32, i32
  }
  func.func @transform_19(%arg0: i32) -> (i32, i32, i32) {
    %c0_i32 = arith.constant 0 : i32
    %c0_i32_0 = arith.constant 0 : i32
    %c0_i32_1 = arith.constant 0 : i32
    %c0_i32_2 = arith.constant 0 : i32
    return %c0_i32, %c0_i32_0, %c0_i32_1 : i32, i32, i32
  }
  func.func @transform_20(%arg0: i32) -> (i32, i32, i32) {
    %c0_i32 = arith.constant 0 : i32
    %c0_i32_0 = arith.constant 0 : i32
    %c0_i32_1 = arith.constant 0 : i32
    return %arg0, %c0_i32, %c0_i32_0 : i32, i32, i32
  }
}

</mosaic_0001>

<bundles_post_ra>
// kernel: tpu_custom_call.1
= control target key start
LH: loop header
LB: loop body
LE: loop exit
PB: predicated region body
PF: predicated region fallthrough
CT: control target
= control target key end

     0   :  { %s5666_s0 = inlined_call_operand.hbm [shape: f32[2,8,32], index: 0, kind: input, shape index: {}]   ;;  %s5667_s1 = inlined_call_operand.hbm [shape: f32[2,1,8], index: 1, kind: input, shape index: {}]   ;;  %s5668_s2 = inlined_call_operand.hbm [shape: f32[1,32], index: 2, kind: input, shape index: {}]   ;;  %s5669_s3 = inlined_call_operand.hbm [shape: f32[1,32], index: 3, kind: input, shape index: {}]   ;;  %s5670_s4 = inlined_call_operand.vmem [shape: bf16[2,32,32], index: 4, kind: input, shape index: {}]   ;;  %s5671_s5 = inlined_call_operand.vmem [shape: f32[2,1,32], index: 5, kind: input, shape index: {}]   ;;  %s5672_s6 = inlined_call_operand.vmem [shape: bf16[2,32,32], index: 6, kind: input, shape index: {}]   ;;  %s5673_s7 = inlined_call_operand.vmem [shape: f32[2,1,32], index: 7, kind: input, shape index: {}]   ;;  %s5674_s8 = inlined_call_operand.vmem [shape: bf16[2,32,32], index: 8, kind: input, shape index: {}]   ;;  %s5675_s9 = inlined_call_operand.vmem [shape: f32[2,1,32], index: 9, kind: input, shape index: {}]   ;;  %s5676_s10 = inlined_call_operand.hbm [shape: bf16[2,32,32], index: 10, kind: input, shape index: {}]   ;;  %s5677_s11 = inlined_call_operand.vmem [shape: f32[2,1,32], index: 11, kind: input, shape index: {}]   ;;  %s5678_s12 = inlined_call_operand.vmem [shape: f32[2,1,32], index: 12, kind: input, shape index: {}]   ;;  %s5679_s13 = inlined_call_operand.vmem [shape: f32[2,1,32], index: 13, kind: input, shape index: {}]   ;;  %s5680_s14 = inlined_call_operand.hbm [shape: bf16[2,32,64], index: 14, kind: input, shape index: {}]   ;;  %s5681_s15 = inlined_call_operand.vmem [shape: f32[2,1,64], index: 15, kind: input, shape index: {}]   ;;  %s5682_s16 = inlined_call_operand.vmem [shape: bf16[2,64,32], index: 16, kind: input, shape index: {}]   ;;  %s5683_s17 = inlined_call_operand.vmem [shape: f32[2,1,32], index: 17, kind: input, shape index: {}]   ;;  %s5684_s18 = inlined_call_operand.vmem [shape: f32[2,1,32], index: 18, kind: input, shape index: {}]   ;;  %s5685_s19 = inlined_call_operand.vmem [shape: f32[2,1,32], index: 19, kind: input, shape index: {}]   ;;  %s5686_s20 = inlined_call_operand.hbm [shape: f32[2,1,32], index: 20, kind: output, shape index: {}]  }
   0x1   :  { %5708 = sst [smem:[#allocation26_spill]] %s5666_s0 }
   0x2   :  { %5709 = sst [smem:[#allocation27_spill]] %s5667_s1 }
   0x3   :  { %5710 = sst [smem:[#allocation28_spill]] %s5668_s2 }
   0x4   :  { %5711 = sst [smem:[#allocation29_spill]] %s5669_s3 }
   0x5   :  { %5712 = sst [smem:[#allocation30_spill]] %s5670_s4 }
   0x6   :  { %5713 = sst [smem:[#allocation31_spill]] %s5671_s5 }
   0x7   :  { %5714 = sst [smem:[#allocation32_spill]] %s5676_s10 }
   0x8   :  { %5715 = sst [smem:[#allocation33_spill]] %s5680_s14 }
   0x9   :  { %5716 = sst [smem:[#allocation34_spill]] %s5681_s15 }
   0xa   :  { %5717 = sst [smem:[#allocation35_spill]] %s5683_s17 }
   0xb   :  { %5718 = sst [smem:[#allocation36_spill]] %s5684_s18 }
   0xc   :  { %5719 = sst [smem:[#allocation37_spill]] %s5685_s19 }
   0xd   :  { %5720 = sst [smem:[#allocation38_spill]] %s5686_s20 }
   0xe   :  { %25 = vsyncpa [#allocation3], 0 }
   0xf   :  { %27 = vsyncpa [#allocation3 + $0x1], 0 }
  0x10   :  { %28 = vsyncpa [#allocation6], 0 }
  0x11   :  { %30 = vsyncpa [#allocation6 + $0x1], 0 }
  0x12   :  { %31 = vsyncpa [#allocation9], 0 }
  0x13   :  { %32 = vsyncpa [#allocation12], 0 }
  0x14   :  { %33 = vsyncpa [#allocation4], 0 }
  0x15   :  { %35 = vsyncpa [#allocation4 + $0x1], 0  ;;  %s4908_s1 = smov 0   ;;  %s4910_s22 = smov 0  }
  0x16   :  { %s4912_s23 = smov 0   ;;  %s4914_s24 = smov 0  }
  0x17 LB: > { %5721 = sst [smem:[#allocation20_spill]] %s4770_s1  ;;  %s4784_s2 = smov [#allocation7]   ;;  %s4782_s24 = sphi %s4914_s24, %s5765_s24   ;;  %s4778_s23 = sphi %s4912_s23, %s5767_s23   ;;  %s4774_s22 = sphi %s4910_s22, %s5769_s22   ;;  %s4770_s1 = sphi %s4908_s1, %s5768_s1  }
  0x18   : > { %5722 = sst [smem:[#allocation21_spill]] %s4778_s23  ;;  %s515_s25 = sshll.u32 %s4784_s2, 4  ;;  %s516_s25 = int_to_ptr.vmem [resolvable:$true] %s515_s25 }
  0x19   : > { %s4929_s3 = sadd.s32 4294967295, %s4782_s24   ;;  %p3949_p0 = scmp.ge.s32.totalorder %s4782_s24, 1 }
  0x1a   : > { %p5692_p1 = scmp.eq.s32.totalorder %s4929_s3, 0  ;;  %p502_p2 = scmp.lt.s32.totalorder %s4782_s24, 3 }
  0x1b   : > { %s4785_s27 = smov [#allocation8]   ;;  %s4786_s4 = smov [#allocation10]  }
  0x1c   : > { %p4934_p3 = pnand %p3949_p0, %p502_p2  ;;  %s526_s28 = sshll.u32 %s4785_s27, 4  ;;  %s527_s28 = int_to_ptr.vmem [resolvable:$true] %s526_s28 }
  0x1d   : > { %s554_s29 = sshll.u32 %s4786_s4, 4  ;;  %s4553_s0 = scalar_lea.vmem %s516_s25, 16  ;;  %s4947_s29 = int_to_ptr.vmem [resolvable:$true] %s554_s29 }
  0x1e   : > { %s5723_s26 = scalar_select %p4934_p3, 1, 0 }
  0x1f   : > { %p4386_p5 = pneg %p4934_p3  ;;  %p4554_p8 = scmp.ne.s32.totalorder %s516_s25, %s4553_s0 }
  0x20   : > { %s4560_s21 = scalar_lea.vmem %s516_s25, 32  ;;  %p4561_p11 = scmp.lt.s32.totalorder %s516_s25, %s516_s25 }
  0x21   : > { %p4943_p6 = pnand %p4386_p5, %p5692_p1  ;;  %p4562_p12 = scmp.lt.s32.totalorder %s4560_s21, %s4553_s0 }
  0x23   : > { %p4544_p7 = pneg %p4943_p6  ;;  %p4563_p13 = por %p4562_p12, %p4561_p11 }
  0x25   : > { %p4556_p9 = pnand %p4554_p8, %p4544_p7 }
  0x27   : > { %p4557_p10 = pneg %p4556_p9 }
  0x29   : > { %p4564_p0 = pnand %p4563_p13, %p4557_p10 }
  0x2b   : > { %4567 = shalt.err (!%p4564_p0)
}
  0x2c   : > { %s5725_s4 = sld [smem:[#allocation28_spill]]  ;;  %s4579_s20 = scalar_lea.vmem %s527_s28, 16 }
  0x2d   : > { %p4580_p2 = scmp.ne.s32.totalorder %s527_s28, %s4579_s20  ;;  %s4586_s19 = scalar_lea.vmem %s527_s28, 32 }
  0x2e   : > { %p4587_p9 = scmp.lt.s32.totalorder %s527_s28, %s527_s28  ;;  %p4588_p4 = scmp.lt.s32.totalorder %s4586_s19, %s4579_s20 }
  0x2f   : > { %p4582_p5 = pnand %p4580_p2, %p4544_p7 }
  0x30   : > { %p4589_p1 = por %p4588_p4, %p4587_p9 }
  0x31   : > { %p4583_p8 = pneg %p4582_p5 }
  0x32   : > { %4389 = dma.hbm_to_vmem [thread:$0]  (!%p4943_p6), %s5725_s4, 16, %s516_s25, [#allocation6]  }
  0x33   : > { %p4590_p11 = pnand %p4589_p1, %p4583_p8 }
  0x35   : > { %4593 = shalt.err (!%p4590_p11)
}
  0x36   : > { %s5726_s18 = sld [smem:[#allocation29_spill]]  ;;  %s4605_s25 = scalar_lea.vmem %s4947_s29, 512 }
  0x37   : > { %p4606_p10 = scmp.ne.s32.totalorder %s4947_s29, %s4605_s25  ;;  %p4613_p4 = scmp.lt.s32.totalorder %s4947_s29, %s4947_s29 }
  0x38   : > { %p4614_p1 = scmp.lt.s32.totalorder %s4605_s25, %s4605_s25 }
  0x39   : > { %p4608_p12 = pnand %p4606_p10, %p4544_p7 }
  0x3a   : > { %p4615_p0 = por %p4614_p1, %p4613_p4 }
  0x3b   : > { %p4609_p13 = pneg %p4608_p12 }
  0x3c   : > { %4392 = dma.hbm_to_vmem [thread:$0]  (!%p4943_p6), %s5726_s18, 16, %s527_s28, [#allocation9]  }
  0x3d   : > { %p4616_p2 = pnand %p4615_p0, %p4609_p13 }
  0x3f   : > { %4619 = shalt.err (!%p4616_p2)
}
  0x40   : > { %s4787_s19 = smov 64   ;;  %s4788_s20 = smov 4  }
  0x41   : > { %s5727_s10 = sld [smem:[#allocation32_spill]]  ;;  %s4789_s28 = smov [#allocation11]  }
  0x42   : > { %s576_s27 = sshll.u32 %s4789_s28, 4  ;;  %s577_s27 = int_to_ptr.vmem [resolvable:$true] %s576_s27 }
  0x43   : > { %s4631_s4 = scalar_lea.vmem %s577_s27, 512  ;;  %p4639_p11 = scmp.lt.s32.totalorder %s577_s27, %s577_s27 }
  0x44   : > { %p4632_p5 = scmp.ne.s32.totalorder %s577_s27, %s4631_s4  ;;  %p4640_p10 = scmp.lt.s32.totalorder %s4631_s4, %s4631_s4 }
  0x46   : > { %p4634_p8 = pnand %p4632_p5, %p4544_p7  ;;  %p4641_p12 = por %p4640_p10, %p4639_p11 }
  0x47   : > { %4395 = dma.hbm_to_vmem [thread:$0]  (!%p4943_p6), %s5727_s10, 512, %s4947_s29, [#allocation9], %s4787_s19, %s4787_s19, %s4788_s20  }
  0x48   : > { %p4635_p9 = pneg %p4634_p8 }
  0x4a   : > { %p4642_p13 = pnand %p4641_p12, %p4635_p9 }
  0x4c   : > { %4645 = shalt.err (!%p4642_p13)
}
  0x4d   : > { %s5728_s14 = sld [smem:[#allocation33_spill]]  ;;  %s3948_s29 = sadd.s32 4294967294, %s4782_s24  }
  0x4e   : > { %s4990_s30 = sadd.s32 1, %s4782_s24   ;;  %s48_s2 = sadd.s32 1, %s4778_s23 }
  0x4f   : > { %5729 = sst [smem:[#allocation22_spill]] %s4990_s30  ;;  %s45_s25 = ssub.s32 %s4782_s24, %s4990_s30 }
  0x50   : > { %p46_p7 = scmp.eq.s32.totalorder %s45_s25, 0  ;;  %p55_p4 = scmp.ne.s32.totalorder %s4778_s23, %s4774_s22 }
  0x51   : > { %p56_p1 = scmp.eq.s32.totalorder %s4782_s24, 0  ;;  %p61_p0 = scmp.ne.s32.totalorder %s4774_s22, %s4770_s1 }
  0x52   : > { %s5001_s18 = scalar_select %p46_p7, %s4778_s23, %s48_s2  }
  0x53   : > { %4398 = dma.hbm_to_vmem [thread:$0]  (!%p4943_p6), %s5728_s14, 512, %s577_s27, [#allocation12], %s4787_s19, %s4787_s19, %s4788_s20  }
  0x54   : > { %5730 = sst [smem:[#allocation23_spill]] %s5001_s18  ;;  %p5003_p2 = por %p56_p1, %p55_p4 }
  0x55   : > { %p5732_p5 = scmp.eq.s32.totalorder %s4929_s3, 0  ;;  %p489_p8 = scmp.eq.s32.totalorder %s4929_s3, 1 }
  0x56   : > { %p495_p9 = scmp.eq.s32.totalorder %s3948_s29, 1  ;;  %p4414_p11 = scmp.lt.s32.totalorder %s4782_s24, 2 }
  0x57   : > { %p5009_p6 = por %p5732_p5, %p61_p0  ;;  %s5016_s20 = sand.u32 1, %s4778_s23  }
  0x58   : > { %p5018_p10 = por %p489_p8, %p55_p4  ;;  %p5022_p12 = por %p495_p9, %p61_p0 }
  0x59   : > { %s5733_s19 = scalar_select %p5009_p6, 1, 0 }
  0x5a   : > { %s5734_s27 = scalar_select %p5018_p10, 1, 0 }
  0x5b   : > { %s5736_s4 = scalar_select %p5022_p12, 1, 0 }
  0x5c   : > { %5735 = sst [smem:[#allocation24_spill]] %s5734_s27  ;;  %s3955_s0 = sshll.u32 %s5016_s20, 3 }
  0x5d   : > { %5737 = sst [smem:[#allocation25_spill]] %s5736_s4  ;;  %s3956_s21 = sshll.u32 %s4782_s24, 7 }
  0x5e   : > { %s5738_s10 = sld [smem:[#allocation26_spill]]  ;;  %s609_s29 = scalar_lea.vmem [#allocation2], %s3955_s0 }
  0x5f   : > { %s616_s18 = sshll.u32 %s609_s29, 4  ;;  %p5037_p13 = pnand %p4414_p11, %p5003_p2  ;;  %s5033_s18 = int_to_ptr.vmem [resolvable:$true] %s616_s18 }
  0x60   : > { %s606_s4 = scalar_lea.sflag [#allocation3], %s5016_s20 }
  0x61   : > { %p4648_p4 = pneg %p5037_p13 }
  0x64   : > { %s5031_s14 = scalar_lea.hbm %s5738_s10, %s3956_s21  ;;  %s4651_s28 = scalar_lea.hbm %s5738_s10, 256 }
  0x65   : > { %s4646_s1 = scalar_lea.hbm %s5031_s14, 128  ;;  %p4652_p2 = scmp.lt.s32.totalorder %s5031_s14, %s5738_s10 }
  0x66   : > { %p4647_p7 = scmp.ne.s32.totalorder %s5031_s14, %s4646_s1  ;;  %p4653_p5 = scmp.lt.s32.totalorder %s4651_s28, %s4646_s1 }
  0x68   : > { %p4649_p1 = pnand %p4648_p4, %p4647_p7  ;;  %p4654_p8 = por %p4653_p5, %p4652_p2 }
  0x6a   : > { %p4650_p0 = pneg %p4649_p1 }
  0x6c   : > { %p4655_p9 = pnand %p4654_p8, %p4650_p0 }
  0x6e   : > { %4658 = shalt.err (!%p4655_p9)
}
  0x6f   : > { %s4659_s29 = scalar_lea.vmem %s5033_s18, 128  ;;  %s4790_s0 = smov [#allocation2]  }
  0x70   : > { %p4660_p11 = scmp.ne.s32.totalorder %s5033_s18, %s4659_s29  ;;  %s4664_s21 = sshll.u32 %s4790_s0, 4  ;;  %s4665_s21 = int_to_ptr.vmem [resolvable:$false] %s4664_s21 }
  0x71   : > { %s4666_s30 = scalar_lea.vmem %s4665_s21, 256  ;;  %p4667_p12 = scmp.lt.s32.totalorder %s5033_s18, %s4665_s21 }
  0x72   : > { %p4662_p7 = pnand %p4660_p11, %p4648_p4  ;;  %p4668_p10 = scmp.lt.s32.totalorder %s4666_s30, %s4659_s29 }
  0x74   : > { %p4663_p1 = pneg %p4662_p7  ;;  %p4669_p6 = por %p4668_p10, %p4667_p12 }
  0x76   : > { %p4670_p2 = pnand %p4669_p6, %p4663_p1 }
  0x78   : > { %4673 = shalt.err (!%p4670_p2)
}
  0x79   : > { %4402 = dma.hbm_to_vmem [thread:$0]  (!%p5037_p13), %s5031_s14, 128, %s5033_s18, %s606_s4  }
  0x7a   : > { %s3957_s1 = sshll.u32 %s4782_s24, 4  ;;  %s626_s28 = scalar_lea.vmem [#allocation5], %s5016_s20 }
  0x7b   : > { %s633_s25 = sshll.u32 %s626_s28, 4  ;;  %s5740_s10 = sld [smem:[#allocation27_spill]]  ;;  %s634_s25 = int_to_ptr.vmem [resolvable:$true] %s633_s25 }
  0x7c   : > { %s5741_s30 = sand.u32 1, %s4782_s24  }
  0x7d   : > { %s624_s29 = scalar_lea.sflag [#allocation6], %s5741_s30 }
  0x81   : > { %s631_s21 = scalar_lea.hbm %s5740_s10, %s3957_s1  ;;  %s4679_s14 = scalar_lea.hbm %s5740_s10, 32 }
  0x82   : > { %s4674_s27 = scalar_lea.hbm %s631_s21, 16  ;;  %p4680_p0 = scmp.lt.s32.totalorder %s631_s21, %s5740_s10 }
  0x83   : > { %p4675_p6 = scmp.ne.s32.totalorder %s631_s21, %s4674_s27  ;;  %p4681_p5 = scmp.lt.s32.totalorder %s4679_s14, %s4674_s27 }
  0x85   : > { %p4677_p10 = pnand %p4675_p6, %p4648_p4  ;;  %p4682_p8 = por %p4681_p5, %p4680_p0 }
  0x87   : > { %p4678_p12 = pneg %p4677_p10 }
  0x89   : > { %p4683_p9 = pnand %p4682_p8, %p4678_p12 }
  0x8b   : > { %4686 = shalt.err (!%p4683_p9)
}
  0x8c   : > { %s4687_s4 = scalar_lea.vmem %s634_s25, 16  ;;  %s4791_s1 = smov [#allocation5]  }
  0x8d   : > { %p4688_p11 = scmp.ne.s32.totalorder %s634_s25, %s4687_s4  ;;  %s4692_s28 = sshll.u32 %s4791_s1, 4  ;;  %s4693_s28 = int_to_ptr.vmem [resolvable:$false] %s4692_s28 }
  0x8e   : > { %s4694_s15 = scalar_lea.vmem %s4693_s28, 32  ;;  %p4695_p2 = scmp.lt.s32.totalorder %s634_s25, %s4693_s28 }
  0x8f   : > { %p4690_p7 = pnand %p4688_p11, %p4648_p4  ;;  %p4696_p6 = scmp.lt.s32.totalorder %s4694_s15, %s4687_s4 }
  0x91   : > { %p4691_p1 = pneg %p4690_p7  ;;  %p4697_p10 = por %p4696_p6, %p4695_p2 }
  0x93   : > { %p4698_p3 = pnand %p4697_p10, %p4691_p1 }
  0x95   : > { %4701 = shalt.err (!%p4698_p3)
}
  0x96   : > { %4405 = dma.hbm_to_vmem [thread:$0]  (!%p5037_p13), %s631_s21, 16, %s634_s25, %s624_s29  }
  0x97   : > { %p5742_p12 = scmp.ne.s32.totalorder %s5723_s26, 0 }
  0x98   : > { %s5091_s17 = sand.u32 (!%p5742_p12), 1, %s4774_s22   ;;  %p5743_p4 = scmp.ne.s32.totalorder (!%p5742_p12), %s5733_s19, 0 }
  0x99   : > { %642 = sbr.rel (%p5742_p12) target bundleno = 5490 (0x1572), region = 100  ;;  %s3959_s27 = sshll.u32 (!%p5742_p12), %s5091_s17, 3 }
  0x9a   : > { %s645_s2 = scalar_lea.sflag (!%p5742_p12), [#allocation3], %s5091_s17  ;;  %s648_s0 = scalar_lea.vmem (!%p5742_p12), [#allocation2], %s3959_s27 }
  0x9e   : > { %4745 = dma.done.wait (%p5743_p4), %s645_s2, 128  }
  0x9f   : > { %4747 = vsyncadd (%p5743_p4), %s645_s2, 4294967168  ;;  %s653_s23 = sand.u32 1, %s4929_s3   ;;  %s656_s25 = scalar_lea.vmem [#allocation5], %s5091_s17 }
  0xa0   : > { %s654_s26 = scalar_lea.sflag [#allocation6], %s653_s23 }
  0xa1   : > { %4749 = dma.done.wait (%p5743_p4), %s654_s26, 16  }
  0xa2   : > { %4751 = vsyncadd (%p5743_p4), %s654_s26, 4294967280  ;;  %p5744_p3 = scmp.eq.s32.totalorder %s4929_s3, 0 }
  0xa4   : > { %4753 = dma.done.wait (%p5744_p3), [#allocation6], 16   ;;  %p5745_p13 = pmov %p5744_p3 }
  0xa5   : > { %p5746_p0 = pmov %p5744_p3 }
  0xa6   : > { %4755 = vsyncadd (%p5745_p13), [#allocation6], 4294967280 }
  0xa7   : > { %4757 = dma.done.wait (%p5746_p0), [#allocation9], 528   ;;  %p5747_p5 = pmov %p5746_p0 }
  0xa8   : > { %p5748_p8 = pmov %p5746_p0 }
  0xa9   : > { %4759 = vsyncadd (%p5747_p5), [#allocation9], 4294966768 }
  0xaa   : > { %4761 = dma.done.wait (%p5748_p8), [#allocation12], 512   ;;  %p5749_p9 = pmov %p5746_p0 }
  0xab   : > { %vm736_vm0 = vcmask 261120   ;;  %v733_v0 = vld [vmem:[%s648_s0] sm:$0xff]  ;;  %s5750_s30 = sld [smem:[#allocation30_spill]]  ;;  %v4792_v9 = vmov 0.0   ;;  %vm4793_vm1 = vmmov 0   ;;  %s4794_s26 = smov 104   ;;  %v974_v42 = vlaneseq }
  0xac   : > { %4763 = vsyncadd (%p5749_p9), [#allocation12], 4294966784  ;;  %v737_v1 = vsel %vm736_vm0, %v733_v0, 0.0  ;;  %v4469_v8 = vld [vmem:[%s5674_s8 + $0x8] sm:$0xff]   ;;  %4164 = vmatprep.subr.bf16.mxu1 %v4792_v9  ;;  %4180 = vmatprep.subr.bf16.mxu0 %v4792_v9  ;;  %v4471_v11 = vld [vmem:[%s5674_s8] sm:$0xff]   ;;  %s4795_s19 = smov 120  }
  0xad   : > { %738 = vadd.xlane.f32.xlu0 %v737_v1  ;;  %4181 = vmatpush3.bf16.msra.mxu0 %v4469_v8  ;;  %v3964_v16 = vld [vmem:[#allocation7] ss:$0 sm:$0xff]  ;;  %v3965_v18 = vld [vmem:[#allocation8] ss:$0 sm:$0xff]  ;;  %v4472_v21 = vld [vmem:[%s5672_s6 + $0x8] sm:$0xff]   ;;  %s5751_s5 = sld [smem:[#allocation31_spill]] }
  0xae   : > { %4182 = vmatprep.subr.bf16.mxu0 %v4792_v9  ;;  %4168 = vmatprep.mubr.msk.bf16.mxu1 %vm4793_vm1, %v4792_v9  ;;  %v4473_v23 = vld [vmem:[%s5672_s6] sm:$0xff]   ;;  %s4796_s14 = smov 112   ;;  %v4797_v40 = vmov 1983009808   ;;  %v4798_v43 = vmov 1934713408  }
  0xaf   : > { %4184 = vmatprep.mubr.msk.bf16.mxu0 %vm4793_vm1, %v4792_v9  ;;  %v3970_v32 = vld [vmem:[%s5673_s7] ss:$0 sm:$0xff]  ;;  %v972_v41 = vunpack.c.l.s4 %v4797_v40  ;;  %v1004_v44 = vunpack.c.l.s4 %v4798_v43  ;;  %v975_v46 = vshrl.u32 %v974_v42, 7  ;;  %vm1409_vm2 = vcmask 64512   ;;  %s4799_s20 = smov 16   ;;  %s4800_s4 = smov 8  }
  0xb0   : > { %vm1659_vm3 = vcmask 1043456   ;;  %s5707_s1 = smov 24   ;;  %vm1990_vm4 = vcmask 130048   ;;  %vm1992_vm5 = vcmask 195584   ;;  %s5752_s21 = sld [smem:[#allocation34_spill]]  ;;  %vm2207_vm6 = vcmask 523264  }
  0xb1   : > { %v4468_v7 = vld [vmem:[%s5750_s30 + $0x8] sm:$0xff]   ;;  %v4470_v10 = vld [vmem:[%s5750_s30] sm:$0xff]   ;;  %4183 = vmatpush3.bf16.msra.mxu0 %v4471_v11  ;;  %v973_v45 = vunpack.c.0.s8 %v972_v41  ;;  %v1005_v49 = vunpack.c.0.s8 %v1004_v44  ;;  %s5753_s18 = sld [smem:[#allocation35_spill]]  ;;  %vm3809_vm7 = vcmask 253952   ;;  %s3812_s2 = scalar_lea.sflag [#allocation4], %s5091_s17 }
  0xb2   : > { %4165 = vmatpush3.bf16.msra.mxu1 %v4468_v7  ;;  %4194 = vmatprep.subr.bf16.mxu0 %v4792_v9  ;;  %s5754_s27 = sld [smem:[#allocation36_spill]] }
  0xb3   : > { %4166 = vmatprep.subr.bf16.mxu1 %v4792_v9  ;;  %v3966_v37 = vld [vmem:[%s5751_s5] ss:$0 sm:$0xff]  ;;  %v5176_v50 = vsub.s32 %v973_v45, %v975_v46  ;;  %v5178_v56 = vsub.s32 %v1005_v49, %v975_v46  ;;  %s5755_s23 = sld [smem:[#allocation37_spill]] }
  0xb4   : > { %s5758_s28 = sld [smem:[#allocation24_spill]] }
  0xb5   : > { %s5759_s15 = sld [smem:[#allocation38_spill]] }
  0xb6   : > { %4167 = vmatpush3.bf16.msra.mxu1 %v4470_v10 }
  0xb7   : > { %4172 = vmatprep.subr.bf16.mxu1 %v4792_v9 }
  0xb9   : > { %s5756_s29 = smov %s5755_s23 }
  0xba   : > { %p5760_p7 = scmp.ne.s32.totalorder %s5758_s28, 0 }
 0x136   : > { %v739_v2 = vpop.xlane.xlu0 %738 }
 0x137   : > { %v741_v3 = vmul.f32 0.03125, %v739_v2 }
 0x139   : > { %v742_v4 = vsub.f32 %v733_v0, %v741_v3 }
 0x13b   : > { %v743_v5 = vmul.f32 %v742_v4, %v742_v4 }
 0x13d   : > { %v744_v6 = vsel %vm736_vm0, %v743_v5, 0.0 }
 0x13e   : > { %745 = vadd.xlane.f32.xlu0 %v744_v6 }
 0x1c7   : > { %v746_v12 = vpop.xlane.xlu0 %745 }
 0x1c8   : > { %v747_v13 = vmul.f32 0.03125, %v746_v12 }
 0x1ca   : > { %v748_v14 = vadd.f32 1e-12, %v747_v13 }
 0x1cc   : > { %4496 = vrsqrt.f32 %v748_v14 }
 0x1d9   : > { %v4497_v15 = vpop.eup %4496 }
 0x1da   : > { %v750_v17 = vmul.f32 %v4497_v15, %v742_v4 }
 0x1dc   : > { %v757_v19 = vmul.f32 %v3964_v16, %v750_v17 }
 0x1de   : > { %v5141_v20 = vadd.f32 %v3965_v18, %v757_v19 }
 0x1e0   : > { %v770_v22 = vpack.c.bf16 %v5141_v20, %v5141_v20 }
 0x1e2   : > { %4169 = vmatmul.mubr.msk.bf16.vlgmr.msra.gmra.mxu1 %vm736_vm0, %v770_v22  ;;  %4185 = vmatmul.mubr.msk.bf16.vlgmr.msra.gmra.mxu0 %vm736_vm0, %v770_v22 }
 0x1e3   : > { %4173 = vmatpush3.bf16.msra.mxu1 %v4472_v21  ;;  %4176 = vmatprep.mubr.msk.bf16.mxu1 %vm4793_vm1, %v4792_v9 }
 0x1e4   : > { %4174 = vmatprep.subr.bf16.mxu1 %v4792_v9  ;;  %4196 = vmatprep.mubr.msk.bf16.mxu0 %vm4793_vm1, %v4792_v9 }
 0x1e7   : > { %4175 = vmatpush3.bf16.msra.mxu1 %v4473_v23 }
 0x1e8   : > { %4188 = vmatprep.subr.bf16.mxu1 %v4792_v9 }
 0x1ea   : > { %4177 = vmatmul.mubr.msk.bf16.vlgmr.msra.gmra.mxu1 %vm736_vm0, %v770_v22 }
 0x1eb   : > { %4190 = vmatprep.mubr.msk.bf16.mxu1 %vm4793_vm1, %v4792_v9 }
 0x2a2   : > { %v827_v24 = vpop.f32.mrf.mxu1  ;;  %v5162_v25 = vpop.f32.mrf.mxu0 }
 0x2a3   : > { %v828_v39 = vadd.f32 %v3966_v37, %v827_v24 }
 0x2a4   : > { %v4170_v26 = vpop.f32.mrf.mxu1  ;;  %v4186_v27 = vpop.f32.mrf.mxu0 }
 0x2a6   : > { %v830_v28 = vpop.f32.mrf.mxu1  ;;  %v956_v29 = vpop.f32.mrf.mxu0 }
 0x2a8   : > { %v4171_v30 = vpop.f32.mrf.mxu1  ;;  %v4187_v31 = vpop.f32.mrf.mxu0 }
 0x2aa   : > { %v890_v33 = vpop.f32.mrf.mxu1 }
 0x2ab   : > { %v891_v34 = vadd.f32 %v3970_v32, %v890_v33 }
 0x2ac   : > { %v4178_v35 = vpop.f32.mrf.mxu1 }
 0x2ad   : > { %1116 = vrot.lane.b32.xlu0 %v891_v34, %s4794_s26  ;;  %1110 = vrot.lane.b32.xlu1 %v891_v34, %s4795_s19 }
 0x2ae   : > { %v893_v36 = vpop.f32.mrf.mxu1 }
 0x2b0   : > { %v4179_v38 = vpop.f32.mrf.mxu1 }
 0x2b1   : > { %1113 = vrot.lane.b32.xlu1 %v891_v34, %s4796_s14 }
 0x2b5   : > { %960 = vrot.lane.b32.xlu1 %v828_v39, %s4795_s19 }
 0x2b9   : > { %963 = vrot.lane.b32.xlu1 %v828_v39, %s4796_s14 }
 0x2bd   : > { %966 = vrot.lane.b32.xlu1 %v828_v39, %s4794_s26 }
 0x31f   : > { %v1117_v47 = vpop.permute.xlu0 %1116  ;;  %v1111_v48 = vpop.permute.xlu1 %1110 }
 0x320   : > { %v1135_v51 = vcombine.low %v1111_v48, %v1117_v47  ;;  %v1136_v52 = vcombine.high %v1111_v48, %v1117_v47 }
 0x322   : > { %v1143_v57 = vrot.slane %v1135_v51, %v5176_v50  ;;  %v1150_v58 = vrot.slane %v1136_v52, %v5176_v50 }
 0x323   : > { %v1114_v53 = vpop.permute.xlu1 %1113 }
 0x324   : > { %v1119_v54 = vcombine.low %v891_v34, %v1114_v53  ;;  %v1120_v55 = vcombine.high %v891_v34, %v1114_v53 }
 0x326   : > { %v1127_v59 = vrot.slane %v1119_v54, %v5176_v50  ;;  %v1134_v60 = vrot.slane %v1120_v55, %v5176_v50 }
 0x327   : > { %v961_v61 = vpop.permute.xlu1 %960 }
 0x328   : > { %v1151_v62 = vcombine.low %v1127_v59, %v1143_v57  ;;  %v1152_v63 = vcombine.high %v1127_v59, %v1143_v57  ;;  %v1167_v0 = vcombine.low %v1134_v60, %v1150_v58  ;;  %v1168_v1 = vcombine.high %v1134_v60, %v1150_v58 }
 0x32a   : > { %v1159_v2 = vrot.slane %v1151_v62, %v5178_v56  ;;  %v1166_v3 = vrot.slane %v1152_v63, %v5178_v56  ;;  %v1175_v4 = vrot.slane %v1167_v0, %v5178_v56  ;;  %v1182_v5 = vrot.slane %v1168_v1, %v5178_v56 }
 0x32b   : > { %v964_v6 = vpop.permute.xlu1 %963 }
 0x32c   : > { %v1187_v7 = vcombine.low %v1159_v2, %v1166_v3  ;;  %v3980_v8 = vcombine.high %v1159_v2, %v1166_v3  ;;  %v1203_v10 = vcombine.low %v1175_v4, %v1182_v5  ;;  %v3981_v11 = vcombine.high %v1175_v4, %v1182_v5 }
 0x32d   : > { %v969_v12 = vcombine.low %v828_v39, %v964_v6  ;;  %v970_v13 = vcombine.high %v828_v39, %v964_v6 }
 0x32e   : > { %v1194_v14 = vrot.slane %v1187_v7, %v5176_v50  ;;  %v1202_v15 = vrot.slane %v3980_v8, %v5176_v50  ;;  %v1210_v16 = vrot.slane %v1203_v10, %v5176_v50  ;;  %v1218_v17 = vrot.slane %v3981_v11, %v5176_v50 }
 0x32f   : > { %v967_v18 = vpop.permute.xlu1 %966  ;;  %v977_v24 = vrot.slane %v969_v12, %v5176_v50  ;;  %v984_v26 = vrot.slane %v970_v13, %v5176_v50 }
 0x330   : > { %v985_v19 = vcombine.low %v961_v61, %v967_v18  ;;  %v986_v21 = vcombine.high %v961_v61, %v967_v18  ;;  %v1219_v22 = vcombine.low %v1194_v14, %v1202_v15  ;;  %v1235_v23 = vcombine.low %v1210_v16, %v1218_v17 }
 0x331   : > { %v1220_v31 = vcombine.high %v1194_v14, %v1202_v15  ;;  %v1236_v32 = vcombine.high %v1210_v16, %v1218_v17 }
 0x332   : > { %v993_v27 = vrot.slane %v985_v19, %v5176_v50  ;;  %v1000_v28 = vrot.slane %v986_v21, %v5176_v50  ;;  %v1227_v29 = vrot.slane %v1219_v22, %v5178_v56  ;;  %v1243_v30 = vrot.slane %v1235_v23, %v5178_v56  ;;  %v5234_v21 = vld [vmem:[%s656_s25] ss:$0 sm:$0xff] }
 0x333   : > { %v1234_v45 = vrot.slane %v1220_v31, %v5178_v56  ;;  %v1250_v46 = vrot.slane %v1236_v32, %v5178_v56 }
 0x334   : > { %v1001_v33 = vcombine.low %v977_v24, %v993_v27  ;;  %v1002_v34 = vcombine.high %v977_v24, %v993_v27  ;;  %v1017_v35 = vcombine.low %v984_v26, %v1000_v28  ;;  %v1018_v36 = vcombine.high %v984_v26, %v1000_v28 }
 0x335   : > { %v1251_v37 = vcombine.low %v1227_v29, %v1243_v30  ;;  %v1252_v38 = vcombine.high %v1227_v29, %v1243_v30  ;;  %v1253_v61 = vcombine.low %v1234_v45, %v1250_v46  ;;  %v1254_v62 = vcombine.high %v1234_v45, %v1250_v46 }
 0x336   : > { %v1009_v39 = vrot.slane %v1001_v33, %v5178_v56  ;;  %v1016_v40 = vrot.slane %v1002_v34, %v5178_v56  ;;  %v1025_v41 = vrot.slane %v1017_v35, %v5178_v56  ;;  %v1032_v42 = vrot.slane %v1018_v36, %v5178_v56 }
 0x337   : > { %v1255_v43 = vpack.c.bf16 %v1251_v37, %v1251_v37  ;;  %v1256_v44 = vpack.c.bf16 %v1252_v38, %v1252_v38  ;;  %v1257_v5 = vpack.c.bf16 %v1253_v61, %v1253_v61  ;;  %v1258_v6 = vpack.c.bf16 %v1254_v62, %v1254_v62 }
 0x338   : > { %v1037_v47 = vcombine.low %v1009_v39, %v1016_v40  ;;  %v3978_v48 = vcombine.high %v1009_v39, %v1016_v40  ;;  %v1053_v49 = vcombine.low %v1025_v41, %v1032_v42  ;;  %v3979_v51 = vcombine.high %v1025_v41, %v1032_v42 }
 0x339   : > { %v1414_v52 = vsel %vm1409_vm2, %v1255_v43, 0  ;;  %v1460_v53 = vsel %vm1409_vm2, %v1256_v44, 0  ;;  %v1506_v12 = vsel %vm1409_vm2, %v1257_v5, 0  ;;  %v1552_v13 = vsel %vm1409_vm2, %v1258_v6, 0 }
 0x33a   : > { %v1044_v54 = vrot.slane %v1037_v47, %v5176_v50  ;;  %v1052_v55 = vrot.slane %v3978_v48, %v5176_v50  ;;  %v1060_v57 = vrot.slane %v1053_v49, %v5176_v50  ;;  %v1068_v58 = vrot.slane %v3979_v51, %v5176_v50  ;;  %4189 = vmatpush3.bf16.xpose.msra.mxu1 %v1414_v52  ;;  %v3974_v49 = vld [vmem:[%s5675_s9] ss:$0 sm:$0xff] }
 0x33b   : > { %4195 = vmatpush3.bf16.xpose.msra.mxu0 %v1460_v53  ;;  %4200 = vmatprep.subr.bf16.mxu1 %v4792_v9  ;;  %v954_v51 = vadd.f32 %v3974_v49, %v5162_v25 }
 0x33c   : > { %v1069_v59 = vcombine.low %v1044_v54, %v1052_v55  ;;  %v1085_v60 = vcombine.low %v1060_v57, %v1068_v58  ;;  %4206 = vmatprep.subr.bf16.mxu0 %v4792_v9  ;;  %v1070_v63 = vcombine.high %v1044_v54, %v1052_v55  ;;  %v1086_v0 = vcombine.high %v1060_v57, %v1068_v58 }
 0x33e   : > { %v1077_v1 = vrot.slane %v1069_v59, %v5178_v56  ;;  %v1093_v2 = vrot.slane %v1085_v60, %v5178_v56  ;;  %v1084_v10 = vrot.slane %v1070_v63, %v5178_v56  ;;  %v1100_v11 = vrot.slane %v1086_v0, %v5178_v56 }
 0x340   : > { %v1101_v3 = vcombine.low %v1077_v1, %v1093_v2  ;;  %v1102_v4 = vcombine.high %v1077_v1, %v1093_v2  ;;  %v1103_v14 = vcombine.low %v1084_v10, %v1100_v11  ;;  %v1104_v15 = vcombine.high %v1084_v10, %v1100_v11 }
 0x342   : > { %v1105_v7 = vpack.c.bf16 %v1101_v3, %v1101_v3  ;;  %v1106_v8 = vpack.c.bf16 %v1102_v4, %v1102_v4  ;;  %v1107_v16 = vpack.c.bf16 %v1103_v14, %v1103_v14  ;;  %v1108_v17 = vpack.c.bf16 %v1104_v15, %v1104_v15 }
 0x344   : > { %4191 = vmatmul.mubr.msk.bf16.vlgmr.msra.gmra.mxu1 %vm1409_vm2, %v1105_v7  ;;  %4197 = vmatmul.mubr.msk.bf16.vlgmr.msra.gmra.mxu0 %vm1409_vm2, %v1106_v8 }
 0x345   : > { %4201 = vmatpush3.bf16.xpose.msra.mxu1 %v1506_v12  ;;  %4207 = vmatpush3.bf16.xpose.msra.mxu0 %v1552_v13 }
 0x346   : > { %4202 = vmatprep.mubr.msk.bf16.mxu1 %vm4793_vm1, %v4792_v9  ;;  %4208 = vmatprep.mubr.msk.bf16.mxu0 %vm4793_vm1, %v4792_v9 }
 0x347   : > { %4212 = vmatprep.subr.bf16.mxu1 %v4792_v9  ;;  %4218 = vmatprep.subr.bf16.mxu0 %v4792_v9 }
 0x34c   : > { %4203 = vmatmul.mubr.msk.bf16.vlgmr.msra.gmra.mxu1 %vm1409_vm2, %v1107_v16  ;;  %4209 = vmatmul.mubr.msk.bf16.vlgmr.msra.gmra.mxu0 %vm1409_vm2, %v1108_v17 }
 0x34d   : > { %4214 = vmatprep.mubr.msk.bf16.mxu1 %vm4793_vm1, %v4792_v9  ;;  %4220 = vmatprep.mubr.msk.bf16.mxu0 %vm4793_vm1, %v4792_v9 }
 0x404   : > { %v1450_v18 = vpop.f32.mrf.mxu1  ;;  %v1496_v19 = vpop.f32.mrf.mxu0 }
 0x405   : > { %v1594_v22 = vmul.f32 0.35355338, %v1450_v18  ;;  %v1595_v23 = vmul.f32 0.35355338, %v1496_v19 }
 0x406   : > { %v4192_v24 = vpop.f32.mrf.mxu1  ;;  %v4198_v26 = vpop.f32.mrf.mxu0 }
 0x407   : > { %v1605_v27 = vadd.f32 %v5234_v21, %v1595_v23  ;;  %v1604_v28 = vadd.f32 %v5234_v21, %v1594_v22 }
 0x408   : > { %v1453_v29 = vpop.f32.mrf.mxu1  ;;  %v1499_v30 = vpop.f32.mrf.mxu0 }
 0x409   : > { %v1611_v31 = vsel %vm1409_vm2, %v1605_v27, -inf  ;;  %v1608_v32 = vsel %vm1409_vm2, %v1604_v28, -inf }
 0x40a   : > { %1612 = vmax.xlane.f32.xlu0 %v1611_v31  ;;  %v4199_v33 = vpop.f32.mrf.mxu0  ;;  %1609 = vmax.xlane.f32.xlu1 %v1608_v32  ;;  %v4193_v34 = vpop.f32.mrf.mxu1 }
 0x40c   : > { %v1542_v35 = vpop.f32.mrf.mxu1  ;;  %v1588_v36 = vpop.f32.mrf.mxu0 }
 0x40d   : > { %v1596_v37 = vmul.f32 0.35355338, %v1542_v35  ;;  %v1597_v38 = vmul.f32 0.35355338, %v1588_v36 }
 0x40e   : > { %v4204_v39 = vpop.f32.mrf.mxu1  ;;  %v4210_v40 = vpop.f32.mrf.mxu0 }
 0x40f   : > { %v1606_v41 = vadd.f32 %v5234_v21, %v1596_v37  ;;  %v1607_v45 = vadd.f32 %v5234_v21, %v1597_v38 }
 0x410   : > { %v1545_v42 = vpop.f32.mrf.mxu1  ;;  %v1591_v43 = vpop.f32.mrf.mxu0 }
 0x411   : > { %v1614_v44 = vsel %vm1409_vm2, %v1606_v41, -inf  ;;  %v1617_v48 = vsel %vm1409_vm2, %v1607_v45, -inf }
 0x412   : > { %v4211_v46 = vpop.f32.mrf.mxu0  ;;  %1615 = vmax.xlane.f32.xlu1 %v1614_v44  ;;  %v4205_v47 = vpop.f32.mrf.mxu1 }
 0x416   : > { %1618 = vmax.xlane.f32.xlu1 %v1617_v48 }
 0x427   : > { %1263 = vrot.lane.b32.xlu1 %v954_v51, %s4796_s14 }
 0x493   : > { %v1613_v52 = vpop.xlane.xlu0 %1612  ;;  %v1610_v53 = vpop.xlane.xlu1 %1609 }
 0x494   : > { %v1621_v54 = vsub.f32 %v1605_v27, %v1613_v52  ;;  %v1620_v55 = vsub.f32 %v1604_v28, %v1610_v53 }
 0x496   : > { %v1626_v57 = vmul.f32 1.442695, %v1621_v54  ;;  %v1624_v58 = vmul.f32 1.442695, %v1620_v55 }
 0x498   : > { %4498 = vpow2.f32 %v1626_v57 }
 0x499   : > { %4500 = vpow2.f32 %v1624_v58 }
 0x49b   : > { %v1616_v62 = vpop.xlane.xlu1 %1615 }
 0x49c   : > { %v1622_v1 = vsub.f32 %v1606_v41, %v1616_v62 }
 0x49e   : > { %v1628_v3 = vmul.f32 1.442695, %v1622_v1 }
 0x49f   : > { %v1619_v63 = vpop.xlane.xlu1 %1618 }
 0x4a0   : > { %v1623_v0 = vsub.f32 %v1607_v45, %v1619_v63 }
 0x4a2   : > { %v1630_v2 = vmul.f32 1.442695, %v1623_v0 }
 0x4a3   : > { %v1264_v8 = vpop.permute.xlu1 %1263 }
 0x4a4   : > { %4502 = vpow2.f32 %v1630_v2  ;;  %v1269_v12 = vcombine.low %v954_v51, %v1264_v8  ;;  %v1270_v13 = vcombine.high %v954_v51, %v1264_v8 }
 0x4a5   : > { %v5249_v59 = vpop.eup %4498  ;;  %4504 = vpow2.f32 %v1628_v3 }
 0x4a6   : > { %v5251_v60 = vpop.eup %4500  ;;  %v1635_v61 = vsel %vm1409_vm2, %v5249_v59, 0.0  ;;  %v1277_v18 = vrot.slane %v1269_v12, %v5176_v50  ;;  %v1284_v19 = vrot.slane %v1270_v13, %v5176_v50 }
 0x4a7   : > { %v1632_v25 = vsel %vm1409_vm2, %v5251_v60, 0.0  ;;  %1636 = vadd.xlane.f32.xlu1 %v1635_v61 }
 0x4a8   : > { %1633 = vadd.xlane.f32.xlu0 %v1632_v25 }
 0x4b1   : > { %v5259_v4 = vpop.eup %4502 }
 0x4b2   : > { %v5261_v5 = vpop.eup %4504  ;;  %v1641_v6 = vsel %vm1409_vm2, %v5259_v4, 0.0 }
 0x4b3   : > { %v1638_v7 = vsel %vm1409_vm2, %v5261_v5, 0.0 }
 0x4b8   : > { %1266 = vrot.lane.b32.xlu1 %v954_v51, %s4794_s26 }
 0x4be   : > { %1260 = vrot.lane.b32.xlu0 %v954_v51, %s4795_s19 }
 0x4dc   : > { %1642 = vadd.xlane.f32.xlu1 %v1641_v6 }
 0x4dd   : > { %1639 = vadd.xlane.f32.xlu0 %v1638_v7 }
 0x530   : > { %v1637_v10 = vpop.xlane.xlu1 %1636 }
 0x531   : > { %v1634_v11 = vpop.xlane.xlu0 %1633  ;;  %4506 = vrcp.f32 %v1637_v10 }
 0x532   : > { %4508 = vrcp.f32 %v1634_v11 }
 0x534   : > { %v1267_v14 = vpop.permute.xlu1 %1266 }
 0x535   : > { %v1261_v15 = vpop.permute.xlu0 %1260 }
 0x536   : > { %v1285_v16 = vcombine.low %v1261_v15, %v1267_v14  ;;  %v1286_v17 = vcombine.high %v1261_v15, %v1267_v14 }
 0x538   : > { %v1293_v22 = vrot.slane %v1285_v16, %v5176_v50  ;;  %v1300_v23 = vrot.slane %v1286_v17, %v5176_v50 }
 0x53a   : > { %v1301_v24 = vcombine.low %v1277_v18, %v1293_v22  ;;  %v1302_v26 = vcombine.high %v1277_v18, %v1293_v22  ;;  %v1317_v27 = vcombine.low %v1284_v19, %v1300_v23  ;;  %v1318_v28 = vcombine.high %v1284_v19, %v1300_v23 }
 0x53c   : > { %v1309_v29 = vrot.slane %v1301_v24, %v5178_v56  ;;  %v1316_v30 = vrot.slane %v1302_v26, %v5178_v56  ;;  %v1325_v31 = vrot.slane %v1317_v27, %v5178_v56  ;;  %v1332_v32 = vrot.slane %v1318_v28, %v5178_v56 }
 0x53e   : > { %v1337_v33 = vcombine.low %v1309_v29, %v1316_v30  ;;  %v3982_v34 = vcombine.high %v1309_v29, %v1316_v30  ;;  %v1353_v35 = vcombine.low %v1325_v31, %v1332_v32  ;;  %v3983_v36 = vcombine.high %v1325_v31, %v1332_v32  ;;  %v4507_v45 = vpop.eup %4506 }
 0x53f   : > { %v4509_v51 = vpop.eup %4508  ;;  %v1649_v25 = vmul.f32 %v4507_v45, %v5249_v59 }
 0x540   : > { %v1344_v37 = vrot.slane %v1337_v33, %v5176_v50  ;;  %v1352_v38 = vrot.slane %v3982_v34, %v5176_v50  ;;  %v1360_v39 = vrot.slane %v1353_v35, %v5176_v50  ;;  %v1368_v40 = vrot.slane %v3983_v36, %v5176_v50 }
 0x541   : > { %v1648_v61 = vmul.f32 %v4509_v51, %v5251_v60  ;;  %v1653_v3 = vpack.c.bf16 %v1649_v25, %v1649_v25 }
 0x542   : > { %v1369_v41 = vcombine.low %v1344_v37, %v1352_v38  ;;  %v1385_v42 = vcombine.low %v1360_v39, %v1368_v40  ;;  %v1370_v43 = vcombine.high %v1344_v37, %v1352_v38  ;;  %v1386_v44 = vcombine.high %v1360_v39, %v1368_v40 }
 0x543   : > { %v1652_v2 = vpack.c.bf16 %v1648_v61, %v1648_v61 }
 0x544   : > { %v1377_v46 = vrot.slane %v1369_v41, %v5178_v56  ;;  %v1393_v47 = vrot.slane %v1385_v42, %v5178_v56  ;;  %v1384_v48 = vrot.slane %v1370_v43, %v5178_v56  ;;  %v1400_v49 = vrot.slane %v1386_v44, %v5178_v56  ;;  %v4474_v43 = vld [vmem:[#allocation10 + $0x8] sm:$0xff]  }
 0x546   : > { %v1401_v52 = vcombine.low %v1377_v46, %v1393_v47  ;;  %v1402_v53 = vcombine.high %v1377_v46, %v1393_v47  ;;  %v1403_v54 = vcombine.low %v1384_v48, %v1400_v49  ;;  %v1404_v55 = vcombine.high %v1384_v48, %v1400_v49 }
 0x548   : > { %v1405_v57 = vpack.c.bf16 %v1401_v52, %v1401_v52  ;;  %v1406_v58 = vpack.c.bf16 %v1402_v53, %v1402_v53  ;;  %v1407_v0 = vpack.c.bf16 %v1403_v54, %v1403_v54  ;;  %v1408_v1 = vpack.c.bf16 %v1404_v55, %v1404_v55  ;;  %v4475_v54 = vld [vmem:[#allocation10] sm:$0xff]  }
 0x54a   : > { %v1661_v62 = vsel %vm1659_vm3, %v1405_v57, 0  ;;  %v1707_v63 = vsel %vm1659_vm3, %v1406_v58, 0  ;;  %v1753_v59 = vsel %vm1659_vm3, %v1407_v0, 0  ;;  %v1799_v60 = vsel %vm1659_vm3, %v1408_v1, 0 }
 0x54b   : > { %4213 = vmatpush3.bf16.msra.mxu1 %v1661_v62  ;;  %4219 = vmatpush3.bf16.msra.mxu0 %v1707_v63 }
 0x54c   : > { %4224 = vmatprep.subr.bf16.mxu1 %v4792_v9  ;;  %4230 = vmatprep.subr.bf16.mxu0 %v4792_v9 }
 0x54e   : > { %4215 = vmatmul.mubr.msk.bf16.vlgmr.msra.gmra.mxu1 %vm1409_vm2, %v1652_v2  ;;  %4221 = vmatmul.mubr.msk.bf16.vlgmr.msra.gmra.mxu0 %vm1409_vm2, %v1653_v3 }
 0x54f   : > { %4225 = vmatpush3.bf16.msra.mxu1 %v1753_v59  ;;  %4231 = vmatpush3.bf16.msra.mxu0 %v1799_v60 }
 0x550   : > { %4226 = vmatprep.mubr.msk.bf16.mxu1 %vm4793_vm1, %v4792_v9  ;;  %4232 = vmatprep.mubr.msk.bf16.mxu0 %vm4793_vm1, %v4792_v9 }
 0x551   : > { %4236 = vmatprep.subr.bf16.mxu1 %v4792_v9  ;;  %4244 = vmatprep.subr.bf16.mxu0 %v4792_v9 }
 0x565   : > { %v1643_v6 = vpop.xlane.xlu1 %1642 }
 0x566   : > { %v1640_v7 = vpop.xlane.xlu0 %1639  ;;  %4510 = vrcp.f32 %v1643_v6 }
 0x567   : > { %4512 = vrcp.f32 %v1640_v7 }
 0x573   : > { %v4511_v8 = vpop.eup %4510 }
 0x574   : > { %v4513_v10 = vpop.eup %4512  ;;  %v1651_v11 = vmul.f32 %v4511_v8, %v5259_v4 }
 0x575   : > { %v1650_v12 = vmul.f32 %v4513_v10, %v5261_v5 }
 0x576   : > { %v1655_v13 = vpack.c.bf16 %v1651_v11, %v1651_v11 }
 0x577   : > { %v1654_v14 = vpack.c.bf16 %v1650_v12, %v1650_v12 }
 0x578   : > { %4233 = vmatmul.mubr.msk.bf16.vlgmr.msra.gmra.mxu0 %vm1409_vm2, %v1655_v13 }
 0x579   : > { %4227 = vmatmul.mubr.msk.bf16.vlgmr.msra.gmra.mxu1 %vm1409_vm2, %v1654_v14  ;;  %4248 = vmatprep.mubr.msk.bf16.mxu0 %vm4793_vm1, %v4792_v9 }
 0x57a   : > { %4240 = vmatprep.mubr.msk.bf16.mxu1 %vm4793_vm1, %v4792_v9  ;;  %4237 = vmatpush3.bf16.msra.mxu1 %v4474_v43  ;;  %v4479_v43 = vld [vmem:[%s5682_s16 + $0x10] sm:$0xff]  }
 0x57b   : > { %4238 = vmatprep.subr.bf16.mxu1 %v4792_v9 }
 0x57e   : > { %4239 = vmatpush3.bf16.msra.mxu1 %v4475_v54 }
 0x57f   : > { %4252 = vmatprep.subr.bf16.mxu1 %v4792_v9 }
 0x60e   : > { %v1697_v15 = vpop.f32.mrf.mxu1  ;;  %v1743_v16 = vpop.f32.mrf.mxu0 }
 0x610   : > { %v4216_v17 = vpop.f32.mrf.mxu1  ;;  %v4222_v18 = vpop.f32.mrf.mxu0 }
 0x611   : > { %v3995_v17 = vld [vmem:[%s5677_s11] ss:$0 sm:$0xff] }
 0x612   : > { %v1700_v19 = vpop.f32.mrf.mxu1  ;;  %v1746_v4 = vpop.f32.mrf.mxu0 }
 0x614   : > { %v4217_v22 = vpop.f32.mrf.mxu1  ;;  %v4223_v5 = vpop.f32.mrf.mxu0 }
 0x638   : > { %v1835_v23 = vpop.f32.mrf.mxu0 }
 0x639   : > { %v1789_v24 = vpop.f32.mrf.mxu1  ;;  %v1857_v26 = vcombine.low %v1743_v16, %v1835_v23  ;;  %v1858_v27 = vcombine.high %v1743_v16, %v1835_v23 }
 0x63a   : > { %v1841_v28 = vcombine.low %v1697_v15, %v1789_v24  ;;  %v1842_v29 = vcombine.high %v1697_v15, %v1789_v24  ;;  %v4234_v30 = vpop.f32.mrf.mxu0 }
 0x63b   : > { %v1865_v31 = vrot.slane %v1857_v26, %v5176_v50  ;;  %v1872_v32 = vrot.slane %v1858_v27, %v5176_v50  ;;  %v4228_v33 = vpop.f32.mrf.mxu1 }
 0x63c   : > { %v1849_v34 = vrot.slane %v1841_v28, %v5176_v50  ;;  %v1856_v35 = vrot.slane %v1842_v29, %v5176_v50  ;;  %v1838_v36 = vpop.f32.mrf.mxu0 }
 0x63d   : > { %v1792_v37 = vpop.f32.mrf.mxu1  ;;  %v3999_v36 = vld [vmem:[%s5678_s12] ss:$0 sm:$0xff] }
 0x63e   : > { %v1873_v38 = vcombine.low %v1849_v34, %v1865_v31  ;;  %v1874_v39 = vcombine.high %v1849_v34, %v1865_v31  ;;  %v1889_v40 = vcombine.low %v1856_v35, %v1872_v32  ;;  %v1890_v41 = vcombine.high %v1856_v35, %v1872_v32  ;;  %v4235_v42 = vpop.f32.mrf.mxu0  ;;  %v4476_v31 = vld [vmem:[#allocation11 + $0x8] sm:$0xff]   ;;  %v4477_v32 = vld [vmem:[#allocation11] sm:$0xff]  }
 0x63f   : > { %v4229_v44 = vpop.f32.mrf.mxu1  ;;  %4245 = vmatpush3.bf16.msra.mxu0 %v4476_v31  ;;  %v4478_v42 = vld [vmem:[%s5682_s16 + $0x18] sm:$0xff]   ;;  %v4487_v31 = vld [vmem:[%s5672_s6 + $0x10] sm:$0xff]  }
 0x640   : > { %v1881_v45 = vrot.slane %v1873_v38, %v5178_v56  ;;  %v1888_v46 = vrot.slane %v1874_v39, %v5178_v56  ;;  %v1897_v47 = vrot.slane %v1889_v40, %v5178_v56  ;;  %v1904_v48 = vrot.slane %v1890_v41, %v5178_v56  ;;  %4246 = vmatprep.subr.bf16.mxu0 %v4792_v9  ;;  %v4000_v38 = vld [vmem:[%s5679_s13] ss:$0 sm:$0xff]  ;;  %v4480_v44 = vld [vmem:[%s5682_s16 + $0x8] sm:$0xff]  }
 0x642   : > { %v1909_v49 = vcombine.low %v1881_v45, %v1888_v46  ;;  %v3993_v51 = vcombine.high %v1881_v45, %v1888_v46  ;;  %v1925_v52 = vcombine.low %v1897_v47, %v1904_v48  ;;  %v3994_v53 = vcombine.high %v1897_v47, %v1904_v48  ;;  %v4481_v45 = vld [vmem:[%s5682_s16] sm:$0xff]  }
 0x643   : > { %4247 = vmatpush3.bf16.msra.mxu0 %v4477_v32  ;;  %v4001_v46 = vld [vmem:[%s5752_s21] ss:$0 sm:$0xff] }
 0x644   : > { %v1916_v55 = vrot.slane %v1909_v49, %v5176_v50  ;;  %v1924_v57 = vrot.slane %v3993_v51, %v5176_v50  ;;  %v1932_v58 = vrot.slane %v1925_v52, %v5176_v50  ;;  %v1940_v61 = vrot.slane %v3994_v53, %v5176_v50  ;;  %4264 = vmatprep.subr.bf16.mxu0 %v4792_v9 }
 0x646   : > { %v1942_v25 = vcombine.high %v1916_v55, %v1924_v57  ;;  %v1958_v62 = vcombine.high %v1932_v58, %v1940_v61  ;;  %v1941_v63 = vcombine.low %v1916_v55, %v1924_v57  ;;  %v1957_v0 = vcombine.low %v1932_v58, %v1940_v61 }
 0x648   : > { %v1956_v1 = vrot.slane %v1942_v25, %v5178_v56  ;;  %v1972_v2 = vrot.slane %v1958_v62, %v5178_v56  ;;  %v1949_v3 = vrot.slane %v1941_v63, %v5178_v56  ;;  %v1965_v59 = vrot.slane %v1957_v0, %v5178_v56 }
 0x64a   : > { %v1975_v60 = vcombine.low %v1956_v1, %v1972_v2  ;;  %v1974_v6 = vcombine.high %v1949_v3, %v1965_v59  ;;  %v1973_v7 = vcombine.low %v1949_v3, %v1965_v59  ;;  %v1976_v8 = vcombine.high %v1956_v1, %v1972_v2  ;;  %v4005_v1 = vld [vmem:[%s5753_s18] ss:$0 sm:$0xff] }
 0x64c   : > { %1982 = vrot.lane.b32.xlu1 %v1975_v60, %s4799_s20  ;;  %1978 = vrot.lane.b32.xlu0 %v1974_v6, %s4800_s4 }
 0x650   : > { %1986 = vrot.lane.b32.xlu0 %v1976_v8, %s5707_s1 }
 0x6be   : > { %v1979_v10 = vpop.permute.xlu0 %1978  ;;  %v1983_v11 = vpop.permute.xlu1 %1982 }
 0x6bf   : > { %v1989_v12 = vsel %vm1409_vm2, %v1973_v7, %v1979_v10 }
 0x6c0   : > { %v1991_v14 = vsel %vm1990_vm4, %v1989_v12, %v1983_v11 }
 0x6c2   : > { %v1987_v13 = vpop.permute.xlu0 %1986 }
 0x6c3   : > { %v1993_v15 = vsel %vm1992_vm5, %v1991_v14, %v1987_v13 }
 0x6c4   : > { %v1998_v16 = vpack.c.bf16 %v1993_v15, %v1993_v15  ;;  %v4482_v15 = vld [vmem:[%s5750_s30 + $0x18] sm:$0xff]  }
 0x6c6   : > { %4241 = vmatmul.mubr.msk.bf16.vlgmr.msra.gmra.mxu1 %vm736_vm0, %v1998_v16  ;;  %v4483_v16 = vld [vmem:[%s5674_s8 + $0x18] sm:$0xff]  }
 0x6c7   : > { %4260 = vmatprep.mubr.msk.bf16.mxu1 %vm4793_vm1, %v4792_v9  ;;  %4253 = vmatpush3.bf16.msra.mxu1 %v4478_v42  ;;  %v4018_v42 = vld [vmem:[%s5751_s5 + $0x1] ss:$0 sm:$0xff] }
 0x6c8   : > { %4254 = vmatprep.subr.bf16.mxu1 %v4792_v9 }
 0x6cb   : > { %4255 = vmatpush3.bf16.msra.mxu1 %v4479_v43 }
 0x6cc   : > { %4256 = vmatprep.subr.bf16.mxu1 %v4792_v9 }
 0x6cf   : > { %4257 = vmatpush3.bf16.msra.mxu1 %v4480_v44 }
 0x6d0   : > { %4258 = vmatprep.subr.bf16.mxu1 %v4792_v9 }
 0x6d3   : > { %4259 = vmatpush3.bf16.msra.mxu1 %v4481_v45 }
 0x6d4   : > { %4280 = vmatprep.subr.bf16.mxu1 %v4792_v9 }
 0x786   : > { %v2055_v18 = vpop.f32.mrf.mxu1 }
 0x787   : > { %v2056_v19 = vadd.f32 %v3995_v17, %v2055_v18  ;;  %v4484_v17 = vld [vmem:[%s5750_s30 + $0x10] sm:$0xff]  }
 0x788   : > { %v4242_v4 = vpop.f32.mrf.mxu1  ;;  %v4485_v18 = vld [vmem:[%s5674_s8 + $0x10] sm:$0xff]  }
 0x789   : > { %v2061_v22 = vadd.f32 %v2056_v19, %v5141_v20 }
 0x78a   : > { %v2058_v5 = vpop.f32.mrf.mxu1 }
 0x78b   : > { %v2064_v23 = vsel %vm736_vm0, %v2061_v22, 0.0 }
 0x78c   : > { %2065 = vadd.xlane.f32.xlu1 %v2064_v23  ;;  %v4243_v24 = vpop.f32.mrf.mxu1  ;;  %v4011_v23 = vld [vmem:[%s5754_s27] ss:$0 sm:$0xff] }
 0x815   : > { %v2066_v26 = vpop.xlane.xlu1 %2065 }
 0x816   : > { %v2067_v27 = vmul.f32 0.03125, %v2066_v26  ;;  %v4012_v26 = vld [vmem:[%s5755_s23] ss:$0 sm:$0xff]  ;;  %s4802_s23 = smov [#allocation13]  }
 0x817   : > { %s4706_s25 = sshll.u32 %s4802_s23, 4  ;;  %s4707_s25 = int_to_ptr.vmem [resolvable:$false] %s4706_s25 }
 0x818   : > { %v2068_v28 = vsub.f32 %v2061_v22, %v2067_v27 }
 0x81a   : > { %v2069_v29 = vmul.f32 %v2068_v28, %v2068_v28 }
 0x81c   : > { %v2070_v30 = vsel %vm736_vm0, %v2069_v29, 0.0  ;;  %v4486_v29 = vld [vmem:[%s5672_s6 + $0x18] sm:$0xff]  }
 0x81d   : > { %2071 = vadd.xlane.f32.xlu0 %v2070_v30 }
 0x8a6   : > { %v2072_v20 = vpop.xlane.xlu0 %2071 }
 0x8a7   : > { %v2073_v33 = vmul.f32 0.03125, %v2072_v20 }
 0x8a9   : > { %v2074_v34 = vadd.f32 1e-12, %v2073_v33 }
 0x8ab   : > { %4514 = vrsqrt.f32 %v2074_v34 }
 0x8b8   : > { %v4515_v35 = vpop.eup %4514 }
 0x8b9   : > { %v2076_v37 = vmul.f32 %v4515_v35, %v2068_v28 }
 0x8bb   : > { %v2083_v39 = vmul.f32 %v3999_v36, %v2076_v37 }
 0x8bd   : > { %v2090_v40 = vadd.f32 %v4000_v38, %v2083_v39  ;;  %v4027_v39 = vld [vmem:[%s5673_s7 + $0x1] ss:$0 sm:$0xff] }
 0x8bf   : > { %v2095_v41 = vpack.c.bf16 %v2090_v40, %v2090_v40 }
 0x8c1   : > { %4249 = vmatmul.mubr.msk.bf16.vlgmr.msra.gmra.mxu0 %vm736_vm0, %v2095_v41 }
 0x8c2   : > { %4268 = vmatprep.mubr.msk.bf16.mxu0 %vm4793_vm1, %v4792_v9  ;;  %4265 = vmatpush3.bf16.msra.mxu0 %v4482_v15 }
 0x8c3   : > { %4266 = vmatprep.subr.bf16.mxu0 %v4792_v9 }
 0x8c6   : > { %4267 = vmatpush3.bf16.msra.mxu0 %v4484_v17 }
 0x8c7   : > { %4272 = vmatprep.subr.bf16.mxu0 %v4792_v9 }
 0x981   : > { %v2152_v47 = vpop.f32.mrf.mxu0 }
 0x982   : > { %v2153_v48 = vadd.f32 %v4001_v46, %v2152_v47 }
 0x983   : > { %v4250_v49 = vpop.f32.mrf.mxu0 }
 0x984   : > { %v2158_v51 = vmul.f32 %v2153_v48, %v2153_v48 }
 0x985   : > { %v2155_v52 = vpop.f32.mrf.mxu0 }
 0x986   : > { %v2159_v53 = vmul.f32 %v2158_v51, %v2153_v48 }
 0x987   : > { %v4251_v54 = vpop.f32.mrf.mxu0 }
 0x988   : > { %v2160_v55 = vmul.f32 0.044715, %v2159_v53 }
 0x98a   : > { %v2161_v57 = vadd.f32 %v2160_v55, %v2153_v48 }
 0x98c   : > { %v2162_v58 = vmul.f32 0.7978846, %v2161_v57 }
 0x98e   : > { %4516 = vtanh.f32 %v2162_v58 }
 0x99b   : > { %v4517_v61 = vpop.eup %4516 }
 0x99c   : > { %v2164_v25 = vadd.f32 1.0, %v4517_v61 }
 0x99e   : > { %v2165_v62 = vmul.f32 0.5, %v2164_v25 }
 0x9a0   : > { %v2166_v63 = vmul.f32 %v2165_v62, %v2153_v48 }
 0x9a2   : > { %v2175_v0 = vpack.c.bf16 %v2166_v63, %v2166_v63 }
 0x9a4   : > { %4261 = vmatmul.mubr.msk.bf16.vlgmr.msra.gmra.mxu1 %vm2207_vm6, %v2175_v0 }
 0x9a5   : > { %4284 = vmatprep.mubr.msk.bf16.mxu1 %vm4793_vm1, %v4792_v9  ;;  %4281 = vmatpush3.bf16.msra.mxu1 %v4483_v16 }
 0x9a6   : > { %4282 = vmatprep.subr.bf16.mxu1 %v4792_v9 }
 0x9a9   : > { %4283 = vmatpush3.bf16.msra.mxu1 %v4485_v18 }
 0x9aa   : > { %4294 = vmatprep.subr.bf16.mxu1 %v4792_v9 }
 0xa64   : > { %v2245_v2 = vpop.f32.mrf.mxu1 }
 0xa65   : > { %v2246_v3 = vadd.f32 %v4005_v1, %v2245_v2 }
 0xa66   : > { %v4262_v59 = vpop.f32.mrf.mxu1 }
 0xa67   : > { %v2251_v60 = vadd.f32 %v2246_v3, %v2090_v40 }
 0xa68   : > { %v2248_v6 = vpop.f32.mrf.mxu1 }
 0xa69   : > { %v2254_v7 = vsel %vm736_vm0, %v2251_v60, 0.0 }
 0xa6a   : > { %2255 = vadd.xlane.f32.xlu0 %v2254_v7  ;;  %v4263_v8 = vpop.f32.mrf.mxu1 }
 0xaf3   : > { %v2256_v10 = vpop.xlane.xlu0 %2255 }
 0xaf4   : > { %v2257_v11 = vmul.f32 0.03125, %v2256_v10 }
 0xaf6   : > { %v2258_v12 = vsub.f32 %v2251_v60, %v2257_v11 }
 0xaf8   : > { %v2259_v13 = vmul.f32 %v2258_v12, %v2258_v12 }
 0xafa   : > { %v2260_v14 = vsel %vm736_vm0, %v2259_v13, 0.0 }
 0xafb   : > { %2261 = vadd.xlane.f32.xlu1 %v2260_v14 }
 0xb84   : > { %v2262_v19 = vpop.xlane.xlu1 %2261 }
 0xb85   : > { %v2263_v4 = vmul.f32 0.03125, %v2262_v19 }
 0xb87   : > { %v2264_v22 = vadd.f32 1e-12, %v2263_v4 }
 0xb89   : > { %4518 = vrsqrt.f32 %v2264_v22 }
 0xb96   : > { %v4519_v5 = vpop.eup %4518 }
 0xb97   : > { %v2266_v24 = vmul.f32 %v4519_v5, %v2258_v12 }
 0xb99   : > { %v2273_v27 = vmul.f32 %v4011_v23, %v2266_v24 }
 0xb9b   : > { %v5400_v28 = vadd.f32 %v4012_v26, %v2273_v27 }
 0xb9d   : > { %v2286_v30 = vpack.c.bf16 %v5400_v28, %v5400_v28 }
 0xb9f   : > { %4269 = vmatmul.mubr.msk.bf16.vlgmr.msra.gmra.mxu0 %vm736_vm0, %v2286_v30  ;;  %4285 = vmatmul.mubr.msk.bf16.vlgmr.msra.gmra.mxu1 %vm736_vm0, %v2286_v30 }
 0xba0   : > { %4273 = vmatpush3.bf16.msra.mxu0 %v4486_v29  ;;  %4276 = vmatprep.mubr.msk.bf16.mxu0 %vm4793_vm1, %v4792_v9 }
 0xba1   : > { %4274 = vmatprep.subr.bf16.mxu0 %v4792_v9  ;;  %4296 = vmatprep.mubr.msk.bf16.mxu1 %vm4793_vm1, %v4792_v9 }
 0xba4   : > { %4275 = vmatpush3.bf16.msra.mxu0 %v4487_v31 }
 0xba5   : > { %4288 = vmatprep.subr.bf16.mxu0 %v4792_v9 }
 0xba7   : > { %4277 = vmatmul.mubr.msk.bf16.vlgmr.msra.gmra.mxu0 %vm736_vm0, %v2286_v30 }
 0xba8   : > { %4290 = vmatprep.mubr.msk.bf16.mxu0 %vm4793_vm1, %v4792_v9 }
 0xc5f   : > { %v2344_v32 = vpop.f32.mrf.mxu0  ;;  %v5421_v20 = vpop.f32.mrf.mxu1 }
 0xc60   : > { %v2345_v45 = vadd.f32 %v4018_v42, %v2344_v32 }
 0xc61   : > { %v4270_v33 = vpop.f32.mrf.mxu0  ;;  %v4286_v34 = vpop.f32.mrf.mxu1 }
 0xc63   : > { %v2347_v35 = vpop.f32.mrf.mxu0  ;;  %v2477_v36 = vpop.f32.mrf.mxu1 }
 0xc65   : > { %v4271_v37 = vpop.f32.mrf.mxu0  ;;  %v4287_v38 = vpop.f32.mrf.mxu1 }
 0xc67   : > { %v2409_v40 = vpop.f32.mrf.mxu0 }
 0xc68   : > { %v2410_v41 = vadd.f32 %v4027_v39, %v2409_v40 }
 0xc69   : > { %v4278_v43 = vpop.f32.mrf.mxu0 }
 0xc6a   : > { %2634 = vrot.lane.b32.xlu1 %v2410_v41, %s4796_s14  ;;  %2631 = vrot.lane.b32.xlu0 %v2410_v41, %s4795_s19 }
 0xc6b   : > { %v2412_v44 = vpop.f32.mrf.mxu0 }
 0xc6d   : > { %v4279_v46 = vpop.f32.mrf.mxu0 }
 0xc6e   : > { %2637 = vrot.lane.b32.xlu1 %v2410_v41, %s4794_s26  ;;  %2481 = vrot.lane.b32.xlu0 %v2345_v45, %s4795_s19 }
 0xc72   : > { %2484 = vrot.lane.b32.xlu1 %v2345_v45, %s4796_s14  ;;  %2487 = vrot.lane.b32.xlu0 %v2345_v45, %s4794_s26 }
 0xcdc   : > { %v2635_v47 = vpop.permute.xlu1 %2634  ;;  %v2632_v48 = vpop.permute.xlu0 %2631 }
 0xcdd   : > { %v2640_v49 = vcombine.low %v2410_v41, %v2635_v47  ;;  %v2641_v51 = vcombine.high %v2410_v41, %v2635_v47 }
 0xcdf   : > { %v2648_v57 = vrot.slane %v2640_v49, %v5176_v50  ;;  %v2655_v58 = vrot.slane %v2641_v51, %v5176_v50 }
 0xce0   : > { %v2638_v52 = vpop.permute.xlu1 %2637  ;;  %v2482_v53 = vpop.permute.xlu0 %2481 }
 0xce1   : > { %v2656_v54 = vcombine.low %v2632_v48, %v2638_v52  ;;  %v2657_v55 = vcombine.high %v2632_v48, %v2638_v52 }
 0xce3   : > { %v2664_v61 = vrot.slane %v2656_v54, %v5176_v50  ;;  %v2671_v25 = vrot.slane %v2657_v55, %v5176_v50 }
 0xce4   : > { %v2485_v62 = vpop.permute.xlu1 %2484  ;;  %v2488_v63 = vpop.permute.xlu0 %2487 }
 0xce5   : > { %v2672_v0 = vcombine.low %v2648_v57, %v2664_v61  ;;  %v2673_v1 = vcombine.high %v2648_v57, %v2664_v61  ;;  %v2688_v2 = vcombine.low %v2655_v58, %v2671_v25  ;;  %v2689_v3 = vcombine.high %v2655_v58, %v2671_v25 }
 0xce6   : > { %v2490_v59 = vcombine.low %v2345_v45, %v2485_v62  ;;  %v2491_v60 = vcombine.high %v2345_v45, %v2485_v62  ;;  %v2506_v6 = vcombine.low %v2482_v53, %v2488_v63  ;;  %v2507_v7 = vcombine.high %v2482_v53, %v2488_v63 }
 0xce7   : > { %v2680_v8 = vrot.slane %v2672_v0, %v5178_v56  ;;  %v2687_v10 = vrot.slane %v2673_v1, %v5178_v56  ;;  %v2696_v11 = vrot.slane %v2688_v2, %v5178_v56  ;;  %v2703_v12 = vrot.slane %v2689_v3, %v5178_v56 }
 0xce8   : > { %v2498_v13 = vrot.slane %v2490_v59, %v5176_v50  ;;  %v2505_v14 = vrot.slane %v2491_v60, %v5176_v50  ;;  %v2514_v15 = vrot.slane %v2506_v6, %v5176_v50  ;;  %v2521_v16 = vrot.slane %v2507_v7, %v5176_v50 }
 0xce9   : > { %v2708_v17 = vcombine.low %v2680_v8, %v2687_v10  ;;  %v4042_v18 = vcombine.high %v2680_v8, %v2687_v10  ;;  %v2724_v19 = vcombine.low %v2696_v11, %v2703_v12  ;;  %v4043_v4 = vcombine.high %v2696_v11, %v2703_v12 }
 0xcea   : > { %v2522_v22 = vcombine.low %v2498_v13, %v2514_v15  ;;  %v2523_v5 = vcombine.high %v2498_v13, %v2514_v15  ;;  %v2538_v23 = vcombine.low %v2505_v14, %v2521_v16  ;;  %v2539_v24 = vcombine.high %v2505_v14, %v2521_v16 }
 0xceb   : > { %v2715_v26 = vrot.slane %v2708_v17, %v5176_v50  ;;  %v2723_v27 = vrot.slane %v4042_v18, %v5176_v50  ;;  %v2731_v29 = vrot.slane %v2724_v19, %v5176_v50  ;;  %v2739_v30 = vrot.slane %v4043_v4, %v5176_v50 }
 0xcec   : > { %v2530_v31 = vrot.slane %v2522_v22, %v5178_v56  ;;  %v2537_v32 = vrot.slane %v2523_v5, %v5178_v56  ;;  %v2546_v33 = vrot.slane %v2538_v23, %v5178_v56  ;;  %v2553_v34 = vrot.slane %v2539_v24, %v5178_v56 }
 0xced   : > { %v2740_v35 = vcombine.low %v2715_v26, %v2723_v27  ;;  %v2756_v36 = vcombine.low %v2731_v29, %v2739_v30  ;;  %v2741_v37 = vcombine.high %v2715_v26, %v2723_v27  ;;  %v2757_v38 = vcombine.high %v2731_v29, %v2739_v30 }
 0xcee   : > { %v2558_v39 = vcombine.low %v2530_v31, %v2537_v32  ;;  %v4040_v40 = vcombine.high %v2530_v31, %v2537_v32  ;;  %v2574_v41 = vcombine.low %v2546_v33, %v2553_v34  ;;  %v4041_v42 = vcombine.high %v2546_v33, %v2553_v34 }
 0xcef   : > { %v2748_v43 = vrot.slane %v2740_v35, %v5178_v56  ;;  %v2764_v44 = vrot.slane %v2756_v36, %v5178_v56  ;;  %v2755_v52 = vrot.slane %v2741_v37, %v5178_v56  ;;  %v2771_v53 = vrot.slane %v2757_v38, %v5178_v56 }
 0xcf0   : > { %v2565_v45 = vrot.slane %v2558_v39, %v5176_v50  ;;  %v2573_v46 = vrot.slane %v4040_v40, %v5176_v50  ;;  %v2581_v47 = vrot.slane %v2574_v41, %v5176_v50  ;;  %v2589_v48 = vrot.slane %v4041_v42, %v5176_v50 }
 0xcf1   : > { %v2772_v49 = vcombine.low %v2748_v43, %v2764_v44  ;;  %v2773_v51 = vcombine.high %v2748_v43, %v2764_v44  ;;  %v2774_v0 = vcombine.low %v2755_v52, %v2771_v53  ;;  %v2775_v1 = vcombine.high %v2755_v52, %v2771_v53 }
 0xcf2   : > { %v2590_v54 = vcombine.low %v2565_v45, %v2573_v46  ;;  %v2606_v55 = vcombine.low %v2581_v47, %v2589_v48  ;;  %v2591_v2 = vcombine.high %v2565_v45, %v2573_v46  ;;  %v2607_v3 = vcombine.high %v2581_v47, %v2589_v48 }
 0xcf3   : > { %v2776_v57 = vpack.c.bf16 %v2772_v49, %v2772_v49  ;;  %v2777_v58 = vpack.c.bf16 %v2773_v51, %v2773_v51  ;;  %v2778_v6 = vpack.c.bf16 %v2774_v0, %v2774_v0  ;;  %v2779_v7 = vpack.c.bf16 %v2775_v1, %v2775_v1  ;;  %v4036_v49 = vld [vmem:[%s5675_s9 + $0x1] ss:$0 sm:$0xff] }
 0xcf4   : > { %v2598_v61 = vrot.slane %v2590_v54, %v5178_v56  ;;  %v2614_v25 = vrot.slane %v2606_v55, %v5178_v56  ;;  %v2605_v11 = vrot.slane %v2591_v2, %v5178_v56  ;;  %v2621_v12 = vrot.slane %v2607_v3, %v5178_v56 }
 0xcf5   : > { %v2934_v62 = vsel %vm1409_vm2, %v2776_v57, 0  ;;  %v2980_v63 = vsel %vm1409_vm2, %v2777_v58, 0  ;;  %v3026_v13 = vsel %vm1409_vm2, %v2778_v6, 0  ;;  %v3072_v14 = vsel %vm1409_vm2, %v2779_v7, 0 }
 0xcf6   : > { %4289 = vmatpush3.bf16.xpose.msra.mxu0 %v2934_v62  ;;  %4295 = vmatpush3.bf16.xpose.msra.mxu1 %v2980_v63  ;;  %v2622_v59 = vcombine.low %v2598_v61, %v2614_v25  ;;  %v2623_v60 = vcombine.high %v2598_v61, %v2614_v25  ;;  %v2624_v15 = vcombine.low %v2605_v11, %v2621_v12 }
 0xcf7   : > { %4300 = vmatprep.subr.bf16.mxu0 %v4792_v9  ;;  %4306 = vmatprep.subr.bf16.mxu1 %v4792_v9  ;;  %v2625_v16 = vcombine.high %v2605_v11, %v2621_v12  ;;  %v2475_v51 = vadd.f32 %v4036_v49, %v5421_v20 }
 0xcf8   : > { %v2626_v8 = vpack.c.bf16 %v2622_v59, %v2622_v59  ;;  %v2627_v10 = vpack.c.bf16 %v2623_v60, %v2623_v60  ;;  %v2628_v17 = vpack.c.bf16 %v2624_v15, %v2624_v15 }
 0xcf9   : > { %v2629_v18 = vpack.c.bf16 %v2625_v16, %v2625_v16 }
 0xcfd   : > { %4291 = vmatmul.mubr.msk.bf16.vlgmr.msra.gmra.mxu0 %vm1409_vm2, %v2626_v8  ;;  %4297 = vmatmul.mubr.msk.bf16.vlgmr.msra.gmra.mxu1 %vm1409_vm2, %v2627_v10 }
 0xcfe   : > { %4301 = vmatpush3.bf16.xpose.msra.mxu0 %v3026_v13  ;;  %4307 = vmatpush3.bf16.xpose.msra.mxu1 %v3072_v14 }
 0xcff   : > { %4302 = vmatprep.mubr.msk.bf16.mxu0 %vm4793_vm1, %v4792_v9  ;;  %4308 = vmatprep.mubr.msk.bf16.mxu1 %vm4793_vm1, %v4792_v9 }
 0xd00   : > { %4312 = vmatprep.subr.bf16.mxu0 %v4792_v9  ;;  %4318 = vmatprep.subr.bf16.mxu1 %v4792_v9 }
 0xd05   : > { %4303 = vmatmul.mubr.msk.bf16.vlgmr.msra.gmra.mxu0 %vm1409_vm2, %v2628_v17  ;;  %4309 = vmatmul.mubr.msk.bf16.vlgmr.msra.gmra.mxu1 %vm1409_vm2, %v2629_v18 }
 0xd06   : > { %4314 = vmatprep.mubr.msk.bf16.mxu0 %vm4793_vm1, %v4792_v9  ;;  %4320 = vmatprep.mubr.msk.bf16.mxu1 %vm4793_vm1, %v4792_v9 }
 0xdbd   : > { %v2970_v19 = vpop.f32.mrf.mxu0  ;;  %v3016_v4 = vpop.f32.mrf.mxu1 }
 0xdbe   : > { %v3114_v22 = vmul.f32 0.35355338, %v2970_v19  ;;  %v3115_v5 = vmul.f32 0.35355338, %v3016_v4 }
 0xdbf   : > { %v4292_v23 = vpop.f32.mrf.mxu0  ;;  %v4298_v24 = vpop.f32.mrf.mxu1 }
 0xdc0   : > { %v3118_v26 = vadd.f32 %v5234_v21, %v3114_v22  ;;  %v3119_v27 = vadd.f32 %v5234_v21, %v3115_v5 }
 0xdc1   : > { %v2973_v29 = vpop.f32.mrf.mxu0  ;;  %v3019_v30 = vpop.f32.mrf.mxu1 }
 0xdc2   : > { %v3122_v31 = vsel %vm1409_vm2, %v3118_v26, -inf  ;;  %v3125_v32 = vsel %vm1409_vm2, %v3119_v27, -inf }
 0xdc3   : > { %3123 = vmax.xlane.f32.xlu1 %v3122_v31  ;;  %v4293_v33 = vpop.f32.mrf.mxu0  ;;  %3126 = vmax.xlane.f32.xlu0 %v3125_v32  ;;  %v4299_v34 = vpop.f32.mrf.mxu1 }
 0xdc5   : > { %v3062_v35 = vpop.f32.mrf.mxu0  ;;  %v3108_v36 = vpop.f32.mrf.mxu1 }
 0xdc6   : > { %v3116_v37 = vmul.f32 0.35355338, %v3062_v35  ;;  %v3117_v38 = vmul.f32 0.35355338, %v3108_v36 }
 0xdc7   : > { %v4304_v39 = vpop.f32.mrf.mxu0  ;;  %v4310_v40 = vpop.f32.mrf.mxu1 }
 0xdc8   : > { %v3120_v41 = vadd.f32 %v5234_v21, %v3116_v37  ;;  %v3121_v42 = vadd.f32 %v5234_v21, %v3117_v38 }
 0xdc9   : > { %v3065_v43 = vpop.f32.mrf.mxu0  ;;  %v3111_v44 = vpop.f32.mrf.mxu1 }
 0xdca   : > { %v3128_v45 = vsel %vm1409_vm2, %v3120_v41, -inf  ;;  %v3131_v46 = vsel %vm1409_vm2, %v3121_v42, -inf }
 0xdcb   : > { %v4305_v47 = vpop.f32.mrf.mxu0  ;;  %3129 = vmax.xlane.f32.xlu0 %v3128_v45  ;;  %3132 = vmax.xlane.f32.xlu1 %v3131_v46  ;;  %v4311_v48 = vpop.f32.mrf.mxu1 }
 0xddc   : > { %2784 = vrot.lane.b32.xlu1 %v2475_v51, %s4796_s14 }
 0xe4c   : > { %v3124_v52 = vpop.xlane.xlu1 %3123  ;;  %v3127_v21 = vpop.xlane.xlu0 %3126 }
 0xe4d   : > { %v3134_v53 = vsub.f32 %v3118_v26, %v3124_v52  ;;  %v3135_v54 = vsub.f32 %v3119_v27, %v3127_v21 }
 0xe4f   : > { %v3138_v55 = vmul.f32 1.442695, %v3134_v53  ;;  %v3140_v57 = vmul.f32 1.442695, %v3135_v54 }
 0xe51   : > { %4520 = vpow2.f32 %v3138_v55 }
 0xe52   : > { %4522 = vpow2.f32 %v3140_v57 }
 0xe54   : > { %v3130_v62 = vpop.xlane.xlu0 %3129  ;;  %v3133_v63 = vpop.xlane.xlu1 %3132 }
 0xe55   : > { %v3136_v0 = vsub.f32 %v3120_v41, %v3130_v62  ;;  %v3137_v1 = vsub.f32 %v3121_v42, %v3133_v63 }
 0xe57   : > { %v3142_v2 = vmul.f32 1.442695, %v3136_v0  ;;  %v3144_v3 = vmul.f32 1.442695, %v3137_v1 }
 0xe58   : > { %v2785_v8 = vpop.permute.xlu1 %2784 }
 0xe59   : > { %4524 = vpow2.f32 %v3142_v2  ;;  %v2790_v12 = vcombine.low %v2475_v51, %v2785_v8  ;;  %v2791_v13 = vcombine.high %v2475_v51, %v2785_v8 }
 0xe5a   : > { %4526 = vpow2.f32 %v3144_v3 }
 0xe5b   : > { %v2798_v18 = vrot.slane %v2790_v12, %v5176_v50  ;;  %v2805_v19 = vrot.slane %v2791_v13, %v5176_v50 }
 0xe5e   : > { %v5500_v58 = vpop.eup %4520 }
 0xe5f   : > { %v5502_v61 = vpop.eup %4522  ;;  %v3146_v25 = vsel %vm1409_vm2, %v5500_v58, 0.0 }
 0xe60   : > { %3147 = vadd.xlane.f32.xlu0 %v3146_v25  ;;  %v3149_v20 = vsel %vm1409_vm2, %v5502_v61, 0.0 }
 0xe61   : > { %3150 = vadd.xlane.f32.xlu1 %v3149_v20 }
 0xe66   : > { %v5510_v59 = vpop.eup %4524 }
 0xe67   : > { %v5512_v60 = vpop.eup %4526  ;;  %v3152_v6 = vsel %vm1409_vm2, %v5510_v59, 0.0 }
 0xe68   : > { %v3155_v7 = vsel %vm1409_vm2, %v5512_v60, 0.0 }
 0xe72   : > { %2787 = vrot.lane.b32.xlu1 %v2475_v51, %s4794_s26  ;;  %s5757_s26 = smov 24  }
 0xe76   : > { %2781 = vrot.lane.b32.xlu0 %v2475_v51, %s4795_s19  ;;  %s731_s19 = scalar_lea.vmem [#allocation13], %s5091_s17 }
 0xe77   : > { %s3824_s14 = sshll.u32 %s731_s19, 4  ;;  %s3825_s14 = int_to_ptr.vmem [resolvable:$true] %s3824_s14 }
 0xe78   : > { %s4702_s0 = scalar_lea.vmem %s3825_s14, 16  ;;  %p4709_p6 = scmp.lt.s32.totalorder %s3825_s14, %s4707_s25 }
 0xe79   : > { %p4703_p11 = scmp.ne.s32.totalorder %s3825_s14, %s4702_s0 }
 0xe7b   : > { %p4704_p1 = pnand %p4703_p11, %p5760_p7 }
 0xe7d   : > { %p4705_p2 = pneg %p4704_p1 }
 0xe95   : > { %3153 = vadd.xlane.f32.xlu0 %v3152_v6 }
 0xe96   : > { %3156 = vadd.xlane.f32.xlu1 %v3155_v7 }
 0xee9   : > { %v3148_v10 = vpop.xlane.xlu0 %3147 }
 0xeea   : > { %v3151_v11 = vpop.xlane.xlu1 %3150  ;;  %4528 = vrcp.f32 %v3148_v10 }
 0xeeb   : > { %4530 = vrcp.f32 %v3151_v11 }
 0xeed   : > { %v2782_v14 = vpop.permute.xlu0 %2781 }
 0xeee   : > { %v2788_v15 = vpop.permute.xlu1 %2787 }
 0xeef   : > { %v2806_v16 = vcombine.low %v2782_v14, %v2788_v15  ;;  %v2807_v17 = vcombine.high %v2782_v14, %v2788_v15 }
 0xef1   : > { %v2814_v4 = vrot.slane %v2806_v16, %v5176_v50  ;;  %v2821_v22 = vrot.slane %v2807_v17, %v5176_v50 }
 0xef3   : > { %v2822_v5 = vcombine.low %v2798_v18, %v2814_v4  ;;  %v2823_v23 = vcombine.high %v2798_v18, %v2814_v4  ;;  %v2838_v24 = vcombine.low %v2805_v19, %v2821_v22  ;;  %v2839_v26 = vcombine.high %v2805_v19, %v2821_v22 }
 0xef5   : > { %v2830_v27 = vrot.slane %v2822_v5, %v5178_v56  ;;  %v2837_v29 = vrot.slane %v2823_v23, %v5178_v56  ;;  %v2846_v30 = vrot.slane %v2838_v24, %v5178_v56  ;;  %v2853_v31 = vrot.slane %v2839_v26, %v5178_v56 }
 0xef7   : > { %v2858_v32 = vcombine.low %v2830_v27, %v2837_v29  ;;  %v4044_v33 = vcombine.high %v2830_v27, %v2837_v29  ;;  %v2874_v34 = vcombine.low %v2846_v30, %v2853_v31  ;;  %v4045_v35 = vcombine.high %v2846_v30, %v2853_v31  ;;  %v4529_v44 = vpop.eup %4528 }
 0xef8   : > { %v4531_v49 = vpop.eup %4530  ;;  %v3162_v57 = vmul.f32 %v4529_v44, %v5500_v58 }
 0xef9   : > { %v2865_v36 = vrot.slane %v2858_v32, %v5176_v50  ;;  %v2873_v37 = vrot.slane %v4044_v33, %v5176_v50  ;;  %v2881_v38 = vrot.slane %v2874_v34, %v5176_v50  ;;  %v2889_v39 = vrot.slane %v4045_v35, %v5176_v50 }
 0xefa   : > { %v3163_v25 = vmul.f32 %v4531_v49, %v5502_v61  ;;  %v3166_v1 = vpack.c.bf16 %v3162_v57, %v3162_v57 }
 0xefb   : > { %v2890_v40 = vcombine.low %v2865_v36, %v2873_v37  ;;  %v2906_v41 = vcombine.low %v2881_v38, %v2889_v39  ;;  %v2891_v42 = vcombine.high %v2865_v36, %v2873_v37  ;;  %v2907_v43 = vcombine.high %v2881_v38, %v2889_v39 }
 0xefc   : > { %v3167_v2 = vpack.c.bf16 %v3163_v25, %v3163_v25 }
 0xefd   : > { %v2898_v45 = vrot.slane %v2890_v40, %v5178_v56  ;;  %v2914_v46 = vrot.slane %v2906_v41, %v5178_v56  ;;  %v2905_v47 = vrot.slane %v2891_v42, %v5178_v56  ;;  %v2921_v48 = vrot.slane %v2907_v43, %v5178_v56  ;;  %v4488_v41 = vld [vmem:[#allocation10 + $0x18] sm:$0xff]  }
 0xeff   : > { %v2922_v51 = vcombine.low %v2898_v45, %v2914_v46  ;;  %v2923_v52 = vcombine.high %v2898_v45, %v2914_v46  ;;  %v2924_v21 = vcombine.low %v2905_v47, %v2921_v48  ;;  %v2925_v53 = vcombine.high %v2905_v47, %v2921_v48 }
 0xf01   : > { %v2926_v54 = vpack.c.bf16 %v2922_v51, %v2922_v51  ;;  %v2927_v55 = vpack.c.bf16 %v2923_v52, %v2923_v52  ;;  %v2928_v63 = vpack.c.bf16 %v2924_v21, %v2924_v21  ;;  %v2929_v0 = vpack.c.bf16 %v2925_v53, %v2925_v53  ;;  %v4489_v52 = vld [vmem:[#allocation10 + $0x10] sm:$0xff]  }
 0xf03   : > { %v3174_v20 = vsel %vm1659_vm3, %v2926_v54, 0  ;;  %v3220_v62 = vsel %vm1659_vm3, %v2927_v55, 0  ;;  %v3266_v58 = vsel %vm1659_vm3, %v2928_v63, 0  ;;  %v3312_v61 = vsel %vm1659_vm3, %v2929_v0, 0 }
 0xf04   : > { %4313 = vmatpush3.bf16.msra.mxu0 %v3174_v20  ;;  %4319 = vmatpush3.bf16.msra.mxu1 %v3220_v62 }
 0xf05   : > { %4324 = vmatprep.subr.bf16.mxu0 %v4792_v9  ;;  %4330 = vmatprep.subr.bf16.mxu1 %v4792_v9 }
 0xf07   : > { %4315 = vmatmul.mubr.msk.bf16.vlgmr.msra.gmra.mxu0 %vm1409_vm2, %v3166_v1  ;;  %4321 = vmatmul.mubr.msk.bf16.vlgmr.msra.gmra.mxu1 %vm1409_vm2, %v3167_v2 }
 0xf08   : > { %4325 = vmatpush3.bf16.msra.mxu0 %v3266_v58  ;;  %4331 = vmatpush3.bf16.msra.mxu1 %v3312_v61 }
 0xf09   : > { %4326 = vmatprep.mubr.msk.bf16.mxu0 %vm4793_vm1, %v4792_v9  ;;  %4332 = vmatprep.mubr.msk.bf16.mxu1 %vm4793_vm1, %v4792_v9 }
 0xf0a   : > { %4336 = vmatprep.subr.bf16.mxu0 %v4792_v9  ;;  %4344 = vmatprep.subr.bf16.mxu1 %v4792_v9 }
 0xf1e   : > { %v3154_v3 = vpop.xlane.xlu0 %3153 }
 0xf1f   : > { %4532 = vrcp.f32 %v3154_v3  ;;  %v3157_v6 = vpop.xlane.xlu1 %3156 }
 0xf20   : > { %4534 = vrcp.f32 %v3157_v6 }
 0xf2c   : > { %v4533_v7 = vpop.eup %4532 }
 0xf2d   : > { %v4535_v8 = vpop.eup %4534  ;;  %v3164_v10 = vmul.f32 %v4533_v7, %v5510_v59 }
 0xf2e   : > { %v3165_v11 = vmul.f32 %v4535_v8, %v5512_v60 }
 0xf2f   : > { %v3168_v12 = vpack.c.bf16 %v3164_v10, %v3164_v10 }
 0xf30   : > { %v3169_v13 = vpack.c.bf16 %v3165_v11, %v3165_v11 }
 0xf31   : > { %4327 = vmatmul.mubr.msk.bf16.vlgmr.msra.gmra.mxu0 %vm1409_vm2, %v3168_v12 }
 0xf32   : > { %4333 = vmatmul.mubr.msk.bf16.vlgmr.msra.gmra.mxu1 %vm1409_vm2, %v3169_v13  ;;  %4340 = vmatprep.mubr.msk.bf16.mxu0 %vm4793_vm1, %v4792_v9  ;;  %v4057_v13 = vld [vmem:[%s5677_s11 + $0x1] ss:$0 sm:$0xff] }
 0xf33   : > { %4348 = vmatprep.mubr.msk.bf16.mxu1 %vm4793_vm1, %v4792_v9  ;;  %4337 = vmatpush3.bf16.msra.mxu0 %v4488_v41  ;;  %v4066_v41 = vld [vmem:[%s5752_s21 + $0x1] ss:$0 sm:$0xff] }
 0xf34   : > { %4338 = vmatprep.subr.bf16.mxu0 %v4792_v9 }
 0xf37   : > { %4339 = vmatpush3.bf16.msra.mxu0 %v4489_v52 }
 0xf38   : > { %4352 = vmatprep.subr.bf16.mxu0 %v4792_v9 }
 0xfc7   : > { %v3210_v14 = vpop.f32.mrf.mxu0  ;;  %v3256_v15 = vpop.f32.mrf.mxu1 }
 0xfc9   : > { %v4316_v16 = vpop.f32.mrf.mxu0  ;;  %v4322_v17 = vpop.f32.mrf.mxu1 }
 0xfcb   : > { %v3213_v18 = vpop.f32.mrf.mxu0  ;;  %v3259_v59 = vpop.f32.mrf.mxu1 }
 0xfcd   : > { %v4317_v19 = vpop.f32.mrf.mxu0  ;;  %v4323_v60 = vpop.f32.mrf.mxu1 }
 0xff1   : > { %v3302_v4 = vpop.f32.mrf.mxu0 }
 0xff2   : > { %v3354_v22 = vcombine.low %v3210_v14, %v3302_v4  ;;  %v3355_v5 = vcombine.high %v3210_v14, %v3302_v4  ;;  %v3348_v23 = vpop.f32.mrf.mxu1 }
 0xff3   : > { %v3370_v24 = vcombine.low %v3256_v15, %v3348_v23  ;;  %v3371_v26 = vcombine.high %v3256_v15, %v3348_v23  ;;  %v4328_v27 = vpop.f32.mrf.mxu0 }
 0xff4   : > { %v3362_v29 = vrot.slane %v3354_v22, %v5176_v50  ;;  %v3369_v30 = vrot.slane %v3355_v5, %v5176_v50  ;;  %v4334_v31 = vpop.f32.mrf.mxu1 }
 0xff5   : > { %v3378_v32 = vrot.slane %v3370_v24, %v5176_v50  ;;  %v3385_v33 = vrot.slane %v3371_v26, %v5176_v50  ;;  %v3305_v34 = vpop.f32.mrf.mxu0  ;;  %v4490_v24 = vld [vmem:[#allocation11 + $0x18] sm:$0xff]   ;;  %v4491_v26 = vld [vmem:[#allocation11 + $0x10] sm:$0xff]   ;;  %v4063_v31 = vld [vmem:[%s5678_s12 + $0x1] ss:$0 sm:$0xff] }
 0xff6   : > { %v3351_v35 = vpop.f32.mrf.mxu1  ;;  %4345 = vmatpush3.bf16.msra.mxu1 %v4490_v24 }
 0xff7   : > { %v3386_v36 = vcombine.low %v3362_v29, %v3378_v32  ;;  %v3387_v37 = vcombine.high %v3362_v29, %v3378_v32  ;;  %v3402_v38 = vcombine.low %v3369_v30, %v3385_v33  ;;  %v3403_v39 = vcombine.high %v3369_v30, %v3385_v33  ;;  %v4329_v40 = vpop.f32.mrf.mxu0  ;;  %4346 = vmatprep.subr.bf16.mxu1 %v4792_v9  ;;  %v4064_v33 = vld [vmem:[%s5679_s13 + $0x1] ss:$0 sm:$0xff] }
 0xff8   : > { %v4335_v42 = vpop.f32.mrf.mxu1  ;;  %v4495_v40 = vld [vmem:[%s5682_s16 + $0x20] sm:$0xff]  }
 0xff9   : > { %v3394_v43 = vrot.slane %v3386_v36, %v5178_v56  ;;  %v3401_v44 = vrot.slane %v3387_v37, %v5178_v56  ;;  %v3410_v45 = vrot.slane %v3402_v38, %v5178_v56  ;;  %v3417_v46 = vrot.slane %v3403_v39, %v5178_v56  ;;  %v4492_v37 = vld [vmem:[%s5682_s16 + $0x38] sm:$0xff]   ;;  %v4493_v38 = vld [vmem:[%s5682_s16 + $0x30] sm:$0xff]   ;;  %v4494_v39 = vld [vmem:[%s5682_s16 + $0x28] sm:$0xff]  }
 0xffa   : > { %4347 = vmatpush3.bf16.msra.mxu1 %v4491_v26 }
 0xffb   : > { %v3422_v47 = vcombine.low %v3394_v43, %v3401_v44  ;;  %v4054_v48 = vcombine.high %v3394_v43, %v3401_v44  ;;  %v3438_v49 = vcombine.low %v3410_v45, %v3417_v46  ;;  %v4055_v51 = vcombine.high %v3410_v45, %v3417_v46 }
 0xffd   : > { %v3429_v21 = vrot.slane %v3422_v47, %v5176_v50  ;;  %v3437_v53 = vrot.slane %v4054_v48, %v5176_v50  ;;  %v3445_v54 = vrot.slane %v3438_v49, %v5176_v50  ;;  %v3453_v55 = vrot.slane %v4055_v51, %v5176_v50 }
 0xfff   : > { %v3455_v57 = vcombine.high %v3429_v21, %v3437_v53  ;;  %v3471_v25 = vcombine.high %v3445_v54, %v3453_v55  ;;  %v3454_v20 = vcombine.low %v3429_v21, %v3437_v53  ;;  %v3470_v62 = vcombine.low %v3445_v54, %v3453_v55 }
0x1001   : > { %v3469_v63 = vrot.slane %v3455_v57, %v5178_v56  ;;  %v3485_v0 = vrot.slane %v3471_v25, %v5178_v56  ;;  %v3462_v1 = vrot.slane %v3454_v20, %v5178_v56  ;;  %v3478_v2 = vrot.slane %v3470_v62, %v5178_v56  ;;  %v4079_v57 = vld [vmem:[%s5753_s18 + $0x1] ss:$0 sm:$0xff] }
0x1003   : > { %v3488_v58 = vcombine.low %v3469_v63, %v3485_v0  ;;  %v3487_v61 = vcombine.high %v3462_v1, %v3478_v2  ;;  %v3486_v3 = vcombine.low %v3462_v1, %v3478_v2  ;;  %v3489_v50 = vcombine.high %v3469_v63, %v3485_v0 }
0x1005   : > { %3495 = vrot.lane.b32.xlu1 %v3488_v58, %s4799_s20  ;;  %3491 = vrot.lane.b32.xlu0 %v3487_v61, %s4800_s4 }
0x1009   : > { %3499 = vrot.lane.b32.xlu0 %v3489_v50, %s5757_s26  ;;  %s4089_s26 = sshll.u32 %s4929_s3, 4  ;;  %s4708_s3 = scalar_lea.vmem %s4707_s25, 32 }
0x100a   : > { %s3822_s1 = scalar_lea.hbm %s5759_s15, %s4089_s26  ;;  %p4710_p10 = scmp.lt.s32.totalorder %s4708_s3, %s4702_s0 }
0x100c   : > { %p4711_p12 = por %p4710_p10, %p4709_p6 }
0x100e   : > { %p4712_p4 = pnand %p4711_p12, %p4705_p2 }
0x1077   : > { %v3492_v6 = vpop.permute.xlu0 %3491  ;;  %v3496_v7 = vpop.permute.xlu1 %3495 }
0x1078   : > { %v3502_v8 = vsel %vm1409_vm2, %v3486_v3, %v3492_v6 }
0x1079   : > { %v3503_v11 = vsel %vm1990_vm4, %v3502_v8, %v3496_v7 }
0x107b   : > { %v3500_v10 = vpop.permute.xlu0 %3499 }
0x107c   : > { %v3504_v12 = vsel %vm1992_vm5, %v3503_v11, %v3500_v10 }
0x107d   : > { %v3510_v56 = vpack.c.bf16 %v3504_v12, %v3504_v12  ;;  %v4087_v12 = vld [vmem:[%s5754_s27 + $0x1] ss:$0 sm:$0xff] }
0x107f   : > { %4341 = vmatmul.mubr.msk.bf16.vlgmr.msra.gmra.mxu0 %vm736_vm0, %v3510_v56 }
0x1080   : > { %4360 = vmatprep.mubr.msk.bf16.mxu0 %vm4793_vm1, %v4792_v9  ;;  %4353 = vmatpush3.bf16.msra.mxu0 %v4492_v37 }
0x1081   : > { %4354 = vmatprep.subr.bf16.mxu0 %v4792_v9 }
0x1084   : > { %4355 = vmatpush3.bf16.msra.mxu0 %v4493_v38 }
0x1085   : > { %4356 = vmatprep.subr.bf16.mxu0 %v4792_v9 }
0x1088   : > { %4357 = vmatpush3.bf16.msra.mxu0 %v4494_v39 }
0x1089   : > { %4358 = vmatprep.subr.bf16.mxu0 %v4792_v9 }
0x108c   : > { %4359 = vmatpush3.bf16.msra.mxu0 %v4495_v40 }
0x113f   : > { %v3568_v14 = vpop.f32.mrf.mxu0 }
0x1140   : > { %v3569_v15 = vadd.f32 %v4057_v13, %v3568_v14  ;;  %v4088_v13 = vld [vmem:[%s5756_s29 + $0x1] ss:$0 sm:$0xff] }
0x1141   : > { %v4342_v16 = vpop.f32.mrf.mxu0 }
0x1142   : > { %v3574_v17 = vadd.f32 %v3569_v15, %v5400_v28 }
0x1143   : > { %v3571_v18 = vpop.f32.mrf.mxu0 }
0x1144   : > { %v3579_v59 = vsel %vm736_vm0, %v3574_v17, 0.0 }
0x1145   : > { %3580 = vadd.xlane.f32.xlu1 %v3579_v59  ;;  %v4343_v19 = vpop.f32.mrf.mxu0 }
0x11ce   : > { %v3581_v60 = vpop.xlane.xlu1 %3580 }
0x11cf   : > { %v3582_v4 = vmul.f32 0.03125, %v3581_v60 }
0x11d1   : > { %v3583_v22 = vsub.f32 %v3574_v17, %v3582_v4 }
0x11d3   : > { %v3584_v5 = vmul.f32 %v3583_v22, %v3583_v22 }
0x11d5   : > { %v3585_v23 = vsel %vm736_vm0, %v3584_v5, 0.0 }
0x11d6   : > { %3586 = vadd.xlane.f32.xlu0 %v3585_v23 }
0x125f   : > { %v3587_v27 = vpop.xlane.xlu0 %3586 }
0x1260   : > { %v3588_v28 = vmul.f32 0.03125, %v3587_v27 }
0x1262   : > { %v3589_v29 = vadd.f32 1e-12, %v3588_v28 }
0x1264   : > { %4536 = vrsqrt.f32 %v3589_v29 }
0x1271   : > { %v4537_v30 = vpop.eup %4536 }
0x1272   : > { %v3591_v32 = vmul.f32 %v4537_v30, %v3583_v22 }
0x1274   : > { %v3598_v34 = vmul.f32 %v4063_v31, %v3591_v32 }
0x1276   : > { %v3605_v35 = vadd.f32 %v4064_v33, %v3598_v34 }
0x1278   : > { %v3611_v36 = vpack.c.bf16 %v3605_v35, %v3605_v35 }
0x127a   : > { %4349 = vmatmul.mubr.msk.bf16.vlgmr.msra.gmra.mxu1 %vm736_vm0, %v3611_v36 }
0x133a   : > { %v3669_v42 = vpop.f32.mrf.mxu1 }
0x133b   : > { %v3670_v43 = vadd.f32 %v4066_v41, %v3669_v42 }
0x133c   : > { %v4350_v44 = vpop.f32.mrf.mxu1 }
0x133d   : > { %v3675_v45 = vmul.f32 %v3670_v43, %v3670_v43 }
0x133e   : > { %v3672_v46 = vpop.f32.mrf.mxu1 }
0x133f   : > { %v3676_v47 = vmul.f32 %v3675_v45, %v3670_v43 }
0x1340   : > { %v4351_v48 = vpop.f32.mrf.mxu1 }
0x1341   : > { %v3677_v49 = vmul.f32 0.044715, %v3676_v47 }
0x1343   : > { %v3678_v51 = vadd.f32 %v3677_v49, %v3670_v43 }
0x1345   : > { %v3679_v52 = vmul.f32 0.7978846, %v3678_v51 }
0x1347   : > { %4538 = vtanh.f32 %v3679_v52 }
0x1354   : > { %v4539_v9 = vpop.eup %4538 }
0x1355   : > { %v3681_v21 = vadd.f32 1.0, %v4539_v9 }
0x1357   : > { %v3682_v53 = vmul.f32 0.5, %v3681_v21 }
0x1359   : > { %v3683_v54 = vmul.f32 %v3682_v53, %v3670_v43 }
0x135b   : > { %v3693_v55 = vpack.c.bf16 %v3683_v54, %v3683_v54 }
0x135d   : > { %4361 = vmatmul.mubr.msk.bf16.vlgmr.msra.gmra.mxu0 %vm2207_vm6, %v3693_v55 }
0x141d   : > { %v3763_v25 = vpop.f32.mrf.mxu0 }
0x141e   : > { %v3764_v20 = vadd.f32 %v4079_v57, %v3763_v25 }
0x141f   : > { %v4362_v62 = vpop.f32.mrf.mxu0 }
0x1420   : > { %v3769_v63 = vadd.f32 %v3764_v20, %v3605_v35 }
0x1421   : > { %v3766_v0 = vpop.f32.mrf.mxu0 }
0x1422   : > { %v3774_v1 = vsel %vm736_vm0, %v3769_v63, 0.0 }
0x1423   : > { %3775 = vadd.xlane.f32.xlu0 %v3774_v1  ;;  %v4363_v2 = vpop.f32.mrf.mxu0 }
0x14ac   : > { %v3776_v58 = vpop.xlane.xlu0 %3775 }
0x14ad   : > { %v3777_v61 = vmul.f32 0.03125, %v3776_v58 }
0x14af   : > { %v3778_v3 = vsub.f32 %v3769_v63, %v3777_v61 }
0x14b1   : > { %v3779_v50 = vmul.f32 %v3778_v3, %v3778_v3 }
0x14b3   : > { %v3780_v6 = vsel %vm736_vm0, %v3779_v50, 0.0 }
0x14b4   : > { %3781 = vadd.xlane.f32.xlu1 %v3780_v6 }
0x153d   : > { %v3782_v7 = vpop.xlane.xlu1 %3781 }
0x153e   : > { %v3783_v8 = vmul.f32 0.03125, %v3782_v7 }
0x1540   : > { %v3784_v10 = vadd.f32 1e-12, %v3783_v8 }
0x1542   : > { %4540 = vrsqrt.f32 %v3784_v10 }
0x154f   : > { %v4541_v11 = vpop.eup %4540 }
0x1550   : > { %v3786_v56 = vmul.f32 %v4541_v11, %v3778_v3 }
0x1552   : > { %v3793_v14 = vmul.f32 %v4087_v12, %v3786_v56 }
0x1554   : > { %v3800_v15 = vadd.f32 %v4088_v13, %v3793_v14 }
0x1556   : > { %v3801_v16 = vsel %vm736_vm0, %v3800_v15, 0.0 }
0x1557   : > { %v3802_v17 = vrot.slane %v3801_v16, 4 }
0x1559   : > { %v3803_v18 = vadd.f32 %v3802_v17, %v3801_v16 }
0x155b   : > { %v3804_v59 = vrot.slane %v3803_v18, 2 }
0x155d   : > { %v3805_v19 = vadd.f32 %v3804_v59, %v3803_v18 }
0x155f   : > { %v3806_v60 = vrot.slane %v3805_v19, 1 }
0x1561   : > { %v3807_v4 = vadd.f32 %v3806_v60, %v3805_v19 }
0x1563   : > { %v3808_v22 = vmul.f32 0.125, %v3807_v4 }
0x1565   : > { %3810 = vst.msk [vmem:[%s731_s19] sm:$0x1] %vm3809_vm7, %v3808_v22 }
0x1566   : > { %4715 = shalt.err (!%p4712_p4)
}
0x1567   : > { %s4716_s5 = scalar_lea.hbm %s3822_s1, 16  ;;  %s4720_s19 = scalar_lea.hbm %s5759_s15, 32 }
0x1568   : > { %p4717_p3 = scmp.ne.s32.totalorder %s3822_s1, %s4716_s5  ;;  %p4721_p5 = scmp.lt.s32.totalorder %s3822_s1, %s5759_s15 }
0x1569   : > { %p4722_p8 = scmp.lt.s32.totalorder %s4720_s19, %s4716_s5 }
0x156a   : > { %p4718_p13 = pnand %p4717_p3, %p5760_p7 }
0x156b   : > { %p4723_p9 = por %p4722_p8, %p4721_p5 }
0x156c   : > { %p4719_p0 = pneg %p4718_p13 }
0x156e   : > { %p4724_p11 = pnand %p4723_p9, %p4719_p0 }
0x1570   : > { %4727 = shalt.err (!%p4724_p11)
}
0x1571   : > { %4384 = dma.vmem_to_hbm [thread:$0]  (%p5760_p7), %s3825_s14, 16, %s3822_s1, %s3812_s2  }
0x1572 PF: > { %s5761_s0 = sld [smem:[#allocation20_spill]]  ;;  %p5764_p2 = scmp.ge.s32.totalorder %s4782_s24, 2 }
0x1573   : > { %s5762_s23 = sld [smem:[#allocation25_spill]] }
0x1578   : > { %s3836_s25 = sand.u32 1, %s5761_s0  }
0x1579   : > { %p5763_p1 = scmp.ne.s32.totalorder %s5762_s23, 0  ;;  %s3837_s3 = scalar_lea.sflag [#allocation4], %s3836_s25 }
0x157b   : > { %p4407_p6 = pnand %p5764_p2, %p5763_p1 }
0x157d   : > { %p4408_p10 = pneg %p4407_p6 }
0x157f   : > { %4765 = dma.done.wait (%p4408_p10), %s3837_s3, 16  }
0x1580   : > { %4767 = vsyncadd (%p4408_p10), %s3837_s3, 4294967280  ;;  %s5765_s24 = sld [smem:[#allocation22_spill]]  ;;  %s5768_s1 = smov %s4774_s22 }
0x1581   : > { %s5766_s5 = sld [smem:[#allocation21_spill]] }
0x1582   : > { %s5767_s23 = sld [smem:[#allocation23_spill]] }
0x1586   : > { %p38_p12 = scmp.ge.s32.totalorder %s5765_s24, 4  }
0x1587   : > { %s5769_s22 = smov %s5766_s5 }
0x1588   :  { %40 = sbr.rel (!%p38_p12) target bundleno = 23 (0x17), region = 190 }
0x158d   :  { %3841 = vsyncpa [#allocation3], 1 }
0x158e   :  { %3843 = vsyncpa [#allocation3 + $0x1], 1 }
0x158f   :  { %3844 = vsyncpa [#allocation6], 1 }
0x1590   :  { %3846 = vsyncpa [#allocation6 + $0x1], 1 }
0x1591   :  { %3847 = vsyncpa [#allocation9], 1 }
0x1592   :  { %3848 = vsyncpa [#allocation12], 1 }
0x1593   :  { %3849 = vsyncpa [#allocation4], 1 }
0x1594   :  { %3851 = vsyncpa [#allocation4 + $0x1], 1 }

</bundles_post_ra>
